<compile_context>
chip_gen: v5e
topology: v5e:2x2
jax: 0.10.0
libtpu: 0.0.40
codegen_flags: <defaults>
</compile_context>

<pallas_src>
import functools

import jax
import jax.numpy as jnp
from jax.experimental import pallas as pl
from jax.experimental.pallas import tpu as pltpu

MIN_NORM = 1e-15
ARTANH_EPS = 1e-15


def _linear_decoder_kernel(c_ref, x_ref, w_ref, b_ref, o_ref):
    # c_ref: SMEM (1,) curvature scalar (scalar prefetch)
    # x_ref: (tile_n, d_in)          input points on the Poincare ball
    # w_ref: (d_in, tile_dout) bf16  pre-transposed, pre-cast weight tile
    # b_ref: (1, tile_dout) f32      bias tile
    # o_ref: (tile_n, tile_dout) f32 output tile
    x = x_ref[...].astype(jnp.float32)
    c = c_ref[0]
    sqrt_c = jnp.sqrt(c)

    # logmap0 on the Poincare ball:
    #   scale = artanh(sqrt_c * ||x||) / (sqrt_c * ||x||)
    norm = jnp.sqrt(jnp.sum(x * x, axis=-1, keepdims=True))
    norm = jnp.maximum(norm, MIN_NORM)
    z = jnp.clip(sqrt_c * norm, -1.0 + ARTANH_EPS, 1.0 - ARTANH_EPS)
    # artanh(z) = 0.5 * log((1+z)/(1-z)); reciprocal + log both go to the EUP.
    artanh = 0.5 * jnp.log((1.0 + z) * pl.reciprocal(1.0 - z, approx=True))
    scale = artanh * pl.reciprocal(sqrt_c * norm, approx=True)
    u = (scale * x).astype(jnp.bfloat16)  # bf16 MXU operand, f32 accumulation

    out = jnp.dot(u, w_ref[...], preferred_element_type=jnp.float32)
    o_ref[...] = out + b_ref[...]


def _round_up(v, m):
    return ((v + m - 1) // m) * m


@functools.partial(jax.jit, static_argnames=("tile_n", "tile_dout"))
def linear_decoder(x, w_t, b, c, *, tile_n=256, tile_dout=128):
    """x: (N, d_in); w_t: (d_in, d_out); b: (d_out,); c: scalar curvature."""
    N, d_in = x.shape
    d_out = w_t.shape[1]
    orig_dtype = x.dtype

    # Sublane granularity depends on the input dtype (f32: 8, bf16: 16).
    sub = 16 if x.dtype == jnp.bfloat16 else 8
    tile_n = max(sub, min(_round_up(tile_n, sub), _round_up(N, sub)))
    n_pad = _round_up(N, tile_n)
    dout_pad = _round_up(d_out, tile_dout)

    # Pad rows (zero rows decode to the bias row; sliced off below) and pad
    # output columns so stores are lane-dense (multiple of 128).
    if n_pad != N:
        x = jnp.pad(x, ((0, n_pad - N), (0, 0)))
    w_bf16 = w_t.astype(jnp.bfloat16)
    b_f32 = b.astype(jnp.float32)
    if dout_pad != d_out:
        w_bf16 = jnp.pad(w_bf16, ((0, 0), (0, dout_pad - d_out)))
        b_f32 = jnp.pad(b_f32, (0, dout_pad - d_out))
    b2 = b_f32.reshape(1, dout_pad)
    c1 = jnp.asarray(c, jnp.float32).reshape(1)

    grid = (n_pad // tile_n, dout_pad // tile_dout)

    # TODO(synk): for very large d_in, add a third (K) grid axis with a VMEM
    # f32 accumulator + pl.when init/finalize instead of a full-d_in block.
    out = pl.pallas_call(
        _linear_decoder_kernel,
        out_shape=jax.ShapeDtypeStruct((n_pad, dout_pad), jnp.float32),
        grid_spec=pltpu.PrefetchScalarGridSpec(
            num_scalar_prefetch=1,  # curvature scalar lands in SMEM
            grid=grid,
            in_specs=[
                pl.BlockSpec((tile_n, d_in), lambda i, j, c_ref: (i, 0)),
                pl.BlockSpec((d_in, tile_dout), lambda i, j, c_ref: (0, j)),
                pl.BlockSpec((1, tile_dout), lambda i, j, c_ref: (0, j)),
            ],
            out_specs=pl.BlockSpec(
                (tile_n, tile_dout), lambda i, j, c_ref: (i, j)),
        ),
        compiler_params=pltpu.CompilerParams(
            dimension_semantics=("parallel", "parallel")),
    )(c1, x, w_bf16, b2)

    return out[:N, :d_out].astype(orig_dtype)


def linear_decoder_ref(x, w_t, b, c):
    """Pure-JAX f32 reference for correctness check."""
    x = x.astype(jnp.float32)
    sqrt_c = jnp.sqrt(c)
    norm = jnp.maximum(jnp.linalg.norm(x, axis=-1, keepdims=True), MIN_NORM)
    z = jnp.clip(sqrt_c * norm, -1.0 + ARTANH_EPS, 1.0 - ARTANH_EPS)
    scale = jnp.arctanh(z) / (sqrt_c * norm)
    u = scale * x
    return u @ w_t.astype(jnp.float32) + b.astype(jnp.float32)[None, :]


if __name__ == "__main__":
    # Node-classification-style shapes: N nodes, in_dim features, out_dim classes.
    N, IN_DIM, OUT_DIM = 512, 64, 7
    C = 1.0  # curvature parameter (torch.nn.Parameter([c]))

    key = jax.random.PRNGKey(0)
    kx, kw, kb = jax.random.split(key, 3)

    # Points strictly inside the Poincare ball (||x|| < 1/sqrt(c)).
    x = 0.05 * jax.random.normal(kx, (N, IN_DIM), dtype=jnp.float32)

    # Deterministic nn.Linear params. PyTorch stores W as (out, in);
    # pre-transpose to (in, out) for the kernel.
    bound = 1.0 / jnp.sqrt(jnp.float32(IN_DIM))
    w = jax.random.uniform(kw, (OUT_DIM, IN_DIM), jnp.float32, -bound, bound)
    b = jax.random.uniform(kb, (OUT_DIM,), jnp.float32, -bound, bound)
    w_t = w.T

    out = linear_decoder(x, w_t, b, C)
    out = jax.block_until_ready(out)

    ref = linear_decoder_ref(x, w_t, b, jnp.float32(C))
    assert out.shape == (N, OUT_DIM), out.shape
    # bf16 MXU operands + approx reciprocal -> loosened tolerance vs f32 ref.
    assert jnp.allclose(out, ref, atol=1e-2, rtol=1e-2), (
        float(jnp.max(jnp.abs(out - ref))))

    print("KERNEL_OK")
</pallas_src>

<mosaic_0001>
module attributes {stable_mosaic.version = 11 : i64} {
  func.func @_linear_decoder_kernel(%arg0: i32, %arg1: i32, %arg2: memref<1xf32, #tpu.memory_space<smem>>, %arg3: memref<256x64xf32, #tpu.memory_space<vmem>>, %arg4: memref<64x128xbf16, #tpu.memory_space<vmem>>, %arg5: memref<1x128xf32, #tpu.memory_space<vmem>>, %arg6: memref<256x128xf32, #tpu.memory_space<vmem>>) attributes {dimension_semantics = [#tpu.dimension_semantics<parallel>, #tpu.dimension_semantics<parallel>], iteration_bounds = array<i64: 2, 1>, scalar_prefetch = 1 : i64, scratch_operands = 0 : i64, tpu.core_type = #tpu.core_type<tc>, window_params = [{transform_indices = @transform_0, window_bounds = array<i64: 256, 64>}, {transform_indices = @transform_1, window_bounds = array<i64: 64, 128>}, {transform_indices = @transform_2, window_bounds = array<i64: 1, 128>}, {transform_indices = @transform_3, window_bounds = array<i64: 256, 128>}]} {
    %c0 = arith.constant 0 : index
    %c0_0 = arith.constant 0 : index
    %0 = vector.load %arg3[%c0, %c0_0] : memref<256x64xf32, #tpu.memory_space<vmem>>, vector<256x64xf32>
    %c0_1 = arith.constant 0 : index
    %1 = memref.load %arg2[%c0_1] : memref<1xf32, #tpu.memory_space<smem>>
    %2 = math.sqrt %1 : f32
    %3 = arith.mulf %0, %0 : vector<256x64xf32>
    %cst = arith.constant dense<0.000000e+00> : vector<256xf32>
    %4 = vector.multi_reduction <add>, %3, %cst [1] : vector<256x64xf32> to vector<256xf32>
    %5 = vector.shape_cast %4 : vector<256xf32> to vector<256x1xf32>
    %6 = math.sqrt %5 : vector<256x1xf32>
    %cst_2 = arith.constant 1.000000e-15 : f32
    %7 = vector.broadcast %cst_2 : f32 to vector<256x1xf32>
    %8 = arith.maximumf %6, %7 : vector<256x1xf32>
    %9 = vector.broadcast %2 : f32 to vector<256x1xf32>
    %10 = arith.mulf %9, %8 : vector<256x1xf32>
    %cst_3 = arith.constant -1.000000e+00 : f32
    %cst_4 = arith.constant 1.000000e+00 : f32
    %11 = vector.broadcast %cst_3 : f32 to vector<256x1xf32>
    %12 = arith.maximumf %11, %10 : vector<256x1xf32>
    %13 = vector.broadcast %cst_4 : f32 to vector<256x1xf32>
    %14 = arith.minimumf %13, %12 : vector<256x1xf32>
    %cst_5 = arith.constant 1.000000e+00 : f32
    %15 = vector.broadcast %cst_5 : f32 to vector<256x1xf32>
    %16 = arith.addf %15, %14 : vector<256x1xf32>
    %cst_6 = arith.constant 1.000000e+00 : f32
    %17 = vector.broadcast %cst_6 : f32 to vector<256x1xf32>
    %18 = arith.subf %17, %14 : vector<256x1xf32>
    %19 = tpu.reciprocal %18 {approx = true} : vector<256x1xf32> -> vector<256x1xf32>
    %20 = arith.mulf %16, %19 : vector<256x1xf32>
    %21 = math.log %20 : vector<256x1xf32>
    %cst_7 = arith.constant 5.000000e-01 : f32
    %22 = vector.broadcast %cst_7 : f32 to vector<256x1xf32>
    %23 = arith.mulf %22, %21 : vector<256x1xf32>
    %24 = vector.broadcast %2 : f32 to vector<256x1xf32>
    %25 = arith.mulf %24, %8 : vector<256x1xf32>
    %26 = tpu.reciprocal %25 {approx = true} : vector<256x1xf32> -> vector<256x1xf32>
    %27 = arith.mulf %23, %26 : vector<256x1xf32>
    %28 = vector.broadcast %27 : vector<256x1xf32> to vector<256x64xf32>
    %29 = arith.mulf %28, %0 : vector<256x64xf32>
    %30 = arith.truncf %29 : vector<256x64xf32> to vector<256x64xbf16>
    %c0_8 = arith.constant 0 : index
    %c0_9 = arith.constant 0 : index
    %31 = vector.load %arg4[%c0_8, %c0_9] : memref<64x128xbf16, #tpu.memory_space<vmem>>, vector<64x128xbf16>
    %cst_10 = arith.constant dense<0.000000e+00> : vector<256x128xf32>
    %32 = tpu.matmul %30, %31, %cst_10 {dimension_numbers = #tpu.dot_dimension_numbers<[1], [0], [0], [1], [0, 0, 1, 1], [], []>} : vector<256x64xbf16>, vector<64x128xbf16>, vector<256x128xf32> -> vector<256x128xf32>
    %c0_11 = arith.constant 0 : index
    %c0_12 = arith.constant 0 : index
    %33 = vector.load %arg5[%c0_11, %c0_12] : memref<1x128xf32, #tpu.memory_space<vmem>>, vector<1x128xf32>
    %34 = vector.broadcast %33 : vector<1x128xf32> to vector<256x128xf32>
    %35 = arith.addf %32, %34 : vector<256x128xf32>
    %c0_13 = arith.constant 0 : index
    %c0_14 = arith.constant 0 : index
    %36 = vector.load %arg6[%c0_13, %c0_14] : memref<256x128xf32, #tpu.memory_space<vmem>>, vector<256x128xf32>
    tpu.vector_store %arg6[%c0_13, %c0_14], %35 {strides = array<i32>} : memref<256x128xf32, #tpu.memory_space<vmem>>, vector<256x128xf32>,
    return
  }
  func.func @transform_0(%arg0: i32, %arg1: i32, %arg2: memref<1xf32, #tpu.memory_space<smem>>) -> (i32, i32) {
    %c0_i32 = arith.constant 0 : i32
    %c0_i32_0 = arith.constant 0 : i32
    return %arg0, %c0_i32 : i32, i32
  }
  func.func @transform_1(%arg0: i32, %arg1: i32, %arg2: memref<1xf32, #tpu.memory_space<smem>>) -> (i32, i32) {
    %c0_i32 = arith.constant 0 : i32
    %c0_i32_0 = arith.constant 0 : i32
    return %c0_i32, %arg1 : i32, i32
  }
  func.func @transform_2(%arg0: i32, %arg1: i32, %arg2: memref<1xf32, #tpu.memory_space<smem>>) -> (i32, i32) {
    %c0_i32 = arith.constant 0 : i32
    %c0_i32_0 = arith.constant 0 : i32
    return %c0_i32, %arg1 : i32, i32
  }
  func.func @transform_3(%arg0: i32, %arg1: i32, %arg2: memref<1xf32, #tpu.memory_space<smem>>) -> (i32, i32) {
    %c0_i32 = arith.constant 0 : i32
    return %arg0, %arg1 : i32, i32
  }
}

</mosaic_0001>

<bundles_post_ra>
// kernel: linear_decoder.1
= control target key start
LH: loop header
LB: loop body
LE: loop exit
PB: predicated region body
PF: predicated region fallthrough
CT: control target
= control target key end

     0   :  { %s2022_s17 = smov 0   ;;  %s2024_s18 = smov 0   ;;  %s3056_s0 = inlined_call_operand.<no memory space> [shape: f32[1], index: 0, kind: input, shape index: {}]   ;;  %s3057_s1 = inlined_call_operand.vmem [shape: f32[512,64], index: 1, kind: input, shape index: {}]   ;;  %s3058_s2 = inlined_call_operand.vmem [shape: bf16[64,128], index: 2, kind: input, shape index: {}]   ;;  %s3059_s3 = inlined_call_operand.vmem [shape: f32[1,128], index: 3, kind: input, shape index: {}]   ;;  %s3060_s4 = inlined_call_operand.vmem [shape: f32[512,128], index: 4, kind: output, shape index: {}]  }
   0x1   :  { %9 = sst [smem:[#allocation3]] %s3056_s0  ;;  %s2026_s19 = smov 0  }
   0x2 LB: > { %s27_s0 = sadd.s32 1, %s1988_s18  ;;  %p1566_p0 = scmp.ge.s32.totalorder %s1992_s19, 1  ;;  %s1992_s19 = sphi %s2026_s19, %s15_s19   ;;  %s1988_s18 = sphi %s2024_s18, %s3070_s18   ;;  %s1984_s17 = sphi %s2022_s17, %s3069_s17  }
   0x3   : > { %p29_p1 = scmp.ge.s32.totalorder %s27_s0, 2  ;;  %p171_p2 = scmp.lt.s32.totalorder %s1992_s19, 3 }
   0x5   : > { %s3072_s0 = smov (%p29_p1, %s27_s0), 0  ;;  %p172_p3 = pnand %p1566_p0, %p171_p2 }
   0x6   : > { %s1567_s20 = sshll.u32 (!%p172_p3), %s1984_s17, 5  ;;  %s260_s25 = sld [smem:[#allocation3]] (!%p172_p3) }
   0x7   : > { %175 = sbr.rel (%p172_p3) target bundleno = 499 (0x1f3), region = 32  ;;  %p206_p4 = scmp.lt.s32.totalorder (!%p172_p3), %s1567_s20, 63 }
   0xc   : > { %s3074_s20 = smov (!%p206_p4, %s1567_s20), 63  ;;  %vm307_vm0 = vcmask 523264   ;;  %v261_v51 = vstv %s260_s25 }
   0xd   : > { %s1568_s21 = sshll.u32 %s3074_s20, 3  ;;  %1680 = vrsqrt.f32 %v261_v51  ;;  %vm269_vm1 = vcmp.eq.f32.partialorder %v261_v51, inf  ;;  %vm271_vm2 = vcmp.eq.f32.partialorder %v261_v51, 0.0 }
   0xe   : > { %s2048_s24 = scalar_lea.vmem %s3057_s1, %s1568_s21  ;;  %s2982_s13 = scalar_lea.vmem %s3060_s4, %s1568_s21 }
   0xf   : > { %v252_v0 = vld [vmem:[%s2048_s24 + $0xc0] sm:$0xff]  ;;  %v253_v6 = vld [vmem:[%s2048_s24 + $0xc8] sm:$0xff]  ;;  %v246_v20 = vld [vmem:[%s2048_s24 + $0x90] sm:$0xff] }
  0x10   : > { %v244_v1 = vld [vmem:[%s2048_s24 + $0x80] sm:$0xff]  ;;  %v299_v3 = vmul.f32 %v252_v0, %v252_v0  ;;  %v245_v7 = vld [vmem:[%s2048_s24 + $0x88] sm:$0xff]  ;;  %v300_v12 = vmul.f32 %v253_v6, %v253_v6  ;;  %v293_v23 = vmul.f32 %v246_v20, %v246_v20  ;;  %v254_v27 = vld [vmem:[%s2048_s24 + $0xd0] sm:$0xff] }
  0x11   : > { %v228_v2 = vld [vmem:[%s2048_s24] sm:$0xff]  ;;  %v291_v4 = vmul.f32 %v244_v1, %v244_v1  ;;  %v229_v11 = vld [vmem:[%s2048_s24 + $0x8] sm:$0xff]  ;;  %v292_v13 = vmul.f32 %v245_v7, %v245_v7  ;;  %v247_v28 = vld [vmem:[%s2048_s24 + $0x98] sm:$0xff]  ;;  %v301_v30 = vmul.f32 %v254_v27, %v254_v27 }
  0x12   : > { %v275_v5 = vmul.f32 %v228_v2, %v228_v2  ;;  %v380_v8 = vsel %vm307_vm0, %v299_v3, 0.0  ;;  %v276_v14 = vmul.f32 %v229_v11, %v229_v11  ;;  %v383_v15 = vsel %vm307_vm0, %v300_v12, 0.0  ;;  %v237_v18 = vld [vmem:[%s2048_s24 + $0x48] sm:$0xff]  ;;  %v236_v19 = vld [vmem:[%s2048_s24 + $0x40] sm:$0xff]  ;;  %v255_v29 = vld [vmem:[%s2048_s24 + $0xd8] sm:$0xff] }
  0x13   : > { %v356_v9 = vsel %vm307_vm0, %v291_v4, 0.0  ;;  %381 = vadd.xlane.f32.xlu1 %v380_v8  ;;  %v359_v16 = vsel %vm307_vm0, %v292_v13, 0.0  ;;  %v284_v21 = vmul.f32 %v237_v18, %v237_v18  ;;  %v283_v22 = vmul.f32 %v236_v19, %v236_v19  ;;  %v231_v36 = vld [vmem:[%s2048_s24 + $0x18] sm:$0xff]  ;;  %v230_v37 = vld [vmem:[%s2048_s24 + $0x10] sm:$0xff]  ;;  %v248_v45 = vld [vmem:[%s2048_s24 + $0xa0] sm:$0xff]  ;;  %v1681_v60 = vpop.eup %1680 }
  0x14   : > { %v308_v10 = vsel %vm307_vm0, %v275_v5, 0.0  ;;  %357 = vadd.xlane.f32.xlu0 %v356_v9  ;;  %v311_v17 = vsel %vm307_vm0, %v276_v14, 0.0  ;;  %v362_v26 = vsel %vm307_vm0, %v293_v23, 0.0  ;;  %v294_v31 = vmul.f32 %v247_v28, %v247_v28  ;;  %v238_v38 = vld [vmem:[%s2048_s24 + $0x50] sm:$0xff]  ;;  %v239_v46 = vld [vmem:[%s2048_s24 + $0x58] sm:$0xff]  ;;  %v249_v47 = vld [vmem:[%s2048_s24 + $0xa8] sm:$0xff] }
  0x15   : > { %309 = vadd.xlane.f32.xlu2 %v308_v10  ;;  %v335_v24 = vsel %vm307_vm0, %v284_v21, 0.0  ;;  %v332_v25 = vsel %vm307_vm0, %v283_v22, 0.0  ;;  %v302_v32 = vmul.f32 %v255_v29, %v255_v29  ;;  %v386_v33 = vsel %vm307_vm0, %v301_v30, 0.0  ;;  %v257_v55 = vld [vmem:[%s2048_s24 + $0xe8] sm:$0xff]  ;;  %v256_v56 = vld [vmem:[%s2048_s24 + $0xe0] sm:$0xff]  ;;  %v250_v18 = vld [vmem:[%s2048_s24 + $0xb0] sm:$0xff] }
  0x16   : > { %v365_v34 = vsel %vm307_vm0, %v294_v31, 0.0  ;;  %v278_v39 = vmul.f32 %v231_v36, %v231_v36  ;;  %v277_v40 = vmul.f32 %v230_v37, %v230_v37  ;;  %v285_v41 = vmul.f32 %v238_v38, %v238_v38  ;;  %v232_v57 = vld [vmem:[%s2048_s24 + $0x20] sm:$0xff]  ;;  %v233_v4 = vld [vmem:[%s2048_s24 + $0x28] sm:$0xff]  ;;  %v258_v19 = vld [vmem:[%s2048_s24 + $0xf0] sm:$0xff] }
  0x17   : > { %v389_v35 = vsel %vm307_vm0, %v302_v32, 0.0  ;;  %v295_v48 = vmul.f32 %v248_v45, %v248_v45  ;;  %v286_v49 = vmul.f32 %v239_v46, %v239_v46  ;;  %v296_v50 = vmul.f32 %v249_v47, %v249_v47  ;;  %v240_v3 = vld [vmem:[%s2048_s24 + $0x60] sm:$0xff]  ;;  %v241_v5 = vld [vmem:[%s2048_s24 + $0x68] sm:$0xff]  ;;  %v234_v28 = vld [vmem:[%s2048_s24 + $0x30] sm:$0xff] }
  0x18   : > { %v317_v42 = vsel %vm307_vm0, %v278_v39, 0.0  ;;  %v314_v43 = vsel %vm307_vm0, %v277_v40, 0.0  ;;  %v338_v44 = vsel %vm307_vm0, %v285_v41, 0.0  ;;  %v304_v58 = vmul.f32 %v257_v55, %v257_v55  ;;  %v259_v29 = vld [vmem:[%s2048_s24 + $0xf8] sm:$0xff]  ;;  %v242_v38 = vld [vmem:[%s2048_s24 + $0x70] sm:$0xff] }
  0x19   : > { %v368_v52 = vsel %vm307_vm0, %v295_v48, 0.0  ;;  %v341_v53 = vsel %vm307_vm0, %v286_v49, 0.0  ;;  %v371_v54 = vsel %vm307_vm0, %v296_v50, 0.0  ;;  %v303_v59 = vmul.f32 %v256_v56, %v256_v56  ;;  %v235_v30 = vld [vmem:[%s2048_s24 + $0x38] sm:$0xff] }
  0x1a   : > { %v279_v61 = vmul.f32 %v232_v57, %v232_v57  ;;  %v263_v62 = vmul.f32 %v1681_v60, %v261_v51  ;;  %v395_v63 = vsel %vm307_vm0, %v304_v58, 0.0  ;;  %v287_v7 = vmul.f32 %v240_v3, %v240_v3  ;;  %v243_v37 = vld [vmem:[%s2048_s24 + $0x78] sm:$0xff] }
  0x1b   : > { %384 = vadd.xlane.f32.xlu1 %v383_v15  ;;  %v392_v0 = vsel %vm307_vm0, %v303_v59, 0.0  ;;  %v280_v8 = vmul.f32 %v233_v4, %v233_v4  ;;  %v288_v10 = vmul.f32 %v241_v5, %v241_v5  ;;  %v272_v12 = vand.u32 2147483648, %v261_v51 }
  0x1c   : > { %360 = vadd.xlane.f32.xlu0 %v359_v16  ;;  %v264_v1 = vmul.f32 %v1681_v60, %v263_v62  ;;  %v320_v2 = vsel %vm307_vm0, %v279_v61, 0.0  ;;  %v344_v13 = vsel %vm307_vm0, %v287_v7, 0.0  ;;  %v297_v23 = vmul.f32 %v250_v18, %v250_v18 }
  0x1d   : > { %312 = vadd.xlane.f32.xlu2 %v311_v17  ;;  %v323_v14 = vsel %vm307_vm0, %v280_v8, 0.0  ;;  %v347_v16 = vsel %vm307_vm0, %v288_v10, 0.0  ;;  %v251_v17 = vld [vmem:[%s2048_s24 + $0xb8] sm:$0xff]  ;;  %v281_v31 = vmul.f32 %v234_v28, %v234_v28  ;;  %v306_v32 = vmul.f32 %v259_v29, %v259_v29 }
  0x1e   : > { %v265_v6 = vmul.f32 0.5, %v264_v1  ;;  %v298_v22 = vmul.f32 %v251_v17, %v251_v17  ;;  %v290_v39 = vmul.f32 %v243_v37, %v243_v37  ;;  %v289_v40 = vmul.f32 %v242_v38, %v242_v38 }
  0x20   : > { %v266_v9 = vsub.f32 1.5, %v265_v6  ;;  %v353_v41 = vsel %vm307_vm0, %v290_v39, 0.0 }
  0x22   : > { %v267_v11 = vmul.f32 %v1681_v60, %v266_v9 }
  0x23   : > { %336 = vadd.xlane.f32.xlu1 %v335_v24  ;;  %v305_v24 = vmul.f32 %v258_v19, %v258_v19 }
  0x24   : > { %333 = vadd.xlane.f32.xlu0 %v332_v25  ;;  %v268_v15 = vmul.f32 %v267_v11, %v261_v51  ;;  %v377_v25 = vsel %vm307_vm0, %v298_v22, 0.0 }
  0x25   : > { %363 = vadd.xlane.f32.xlu2 %v362_v26  ;;  %v374_v26 = vsel %vm307_vm0, %v297_v23, 0.0  ;;  %v398_v27 = vsel %vm307_vm0, %v305_v24, 0.0 }
  0x26   : > { %v270_v20 = vsel %vm269_vm1, %v261_v51, %v268_v15 }
  0x27   : > { %v273_v21 = vsel %vm271_vm2, %v272_v12, %v270_v20 }
  0x28   : > { %1653 = vpush %v273_v21 }
  0x2b   : > { %387 = vadd.xlane.f32.xlu1 %v386_v33  ;;  %v282_v33 = vmul.f32 %v235_v30, %v235_v30 }
  0x2c   : > { %366 = vadd.xlane.f32.xlu0 %v365_v34  ;;  %v326_v34 = vsel %vm307_vm0, %v281_v31, 0.0 }
  0x2d   : > { %390 = vadd.xlane.f32.xlu2 %v389_v35  ;;  %v401_v35 = vsel %vm307_vm0, %v306_v32, 0.0  ;;  %v329_v36 = vsel %vm307_vm0, %v282_v33, 0.0  ;;  %v1640_v32 = vld [vmem:[%s3058_s2 + $0x18] sm:$0xff] }
  0x2e   : > { %1341 = vmatpush.bf16.msra.mxu0 %v1640_v32  ;;  %1642 = vmatpush.bf16.msra.mxu2 %v1640_v32 }
  0x2f   : > { %1643 = vmatpush.bf16.msra.mxu3 %v1640_v32  ;;  %1641 = vmatpush.bf16.msra.mxu1 %v1640_v32 }
  0x33   : > { %318 = vadd.xlane.f32.xlu1 %v317_v42  ;;  %v350_v42 = vsel %vm307_vm0, %v289_v40, 0.0 }
  0x34   : > { %315 = vadd.xlane.f32.xlu0 %v314_v43 }
  0x35   : > { %339 = vadd.xlane.f32.xlu2 %v338_v44 }
  0x3b   : > { %369 = vadd.xlane.f32.xlu1 %v368_v52 }
  0x3c   : > { %342 = vadd.xlane.f32.xlu0 %v341_v53 }
  0x3d   : > { %372 = vadd.xlane.f32.xlu2 %v371_v54 }
  0x43   : > { %396 = vadd.xlane.f32.xlu1 %v395_v63 }
  0x44   : > { %393 = vadd.xlane.f32.xlu0 %v392_v0 }
  0x45   : > { %321 = vadd.xlane.f32.xlu2 %v320_v2 }
  0x4b   : > { %345 = vadd.xlane.f32.xlu1 %v344_v13 }
  0x4c   : > { %324 = vadd.xlane.f32.xlu0 %v323_v14 }
  0x4d   : > { %348 = vadd.xlane.f32.xlu2 %v347_v16 }
  0x53   : > { %378 = vadd.xlane.f32.xlu1 %v377_v25 }
  0x54   : > { %375 = vadd.xlane.f32.xlu0 %v374_v26 }
  0x55   : > { %399 = vadd.xlane.f32.xlu2 %v398_v27 }
  0x59   : > { %s1654_s26 = spop %1653 }
  0x5a   : > { %v2163_v22 = vstv %s1654_s26 }
  0x5b   : > { %327 = vadd.xlane.f32.xlu1 %v326_v34 }
  0x5c   : > { %402 = vadd.xlane.f32.xlu0 %v401_v35 }
  0x5d   : > { %330 = vadd.xlane.f32.xlu2 %v329_v36 }
  0x63   : > { %354 = vadd.xlane.f32.xlu1 %v353_v41 }
  0x64   : > { %351 = vadd.xlane.f32.xlu0 %v350_v42 }
  0x86   : > { %v2114_v43 = vpop.xlane.xlu1 %381 }
  0x87   : > { %v2116_v44 = vpop.xlane.xlu0 %357  ;;  %1682 = vrsqrt.f32 %v2114_v43  ;;  %vm699_vm3 = vcmp.eq.f32.partialorder %v2114_v43, inf  ;;  %vm701_vm4 = vcmp.eq.f32.partialorder %v2114_v43, 0.0  ;;  %v702_v26 = vand.u32 2147483648, %v2114_v43 }
  0x88   : > { %v2119_v45 = vpop.xlane.xlu2 %309  ;;  %1684 = vrsqrt.f32 %v2116_v44  ;;  %vm603_vm5 = vcmp.eq.f32.partialorder %v2116_v44, inf  ;;  %vm605_vm6 = vcmp.eq.f32.partialorder %v2116_v44, 0.0  ;;  %v606_v30 = vand.u32 2147483648, %v2116_v44 }
  0x89   : > { %1686 = vrsqrt.f32 %v2119_v45  ;;  %vm411_vm7 = vcmp.eq.f32.partialorder %v2119_v45, inf  ;;  %v414_v35 = vand.u32 2147483648, %v2119_v45  ;;  %vm413_vm8 = vcmp.eq.f32.partialorder %v2119_v45, 0.0 }
  0x8d   : > { %v1683_v46 = vpop.eup %1682 }
  0x8e   : > { %v1685_v47 = vpop.eup %1684  ;;  %v693_v48 = vmul.f32 %v1683_v46, %v2114_v43  ;;  %v2124_v49 = vpop.xlane.xlu1 %384 }
  0x8f   : > { %v2126_v50 = vpop.xlane.xlu0 %360  ;;  %1688 = vrsqrt.f32 %v2124_v49  ;;  %v1687_v52 = vpop.eup %1686  ;;  %v597_v54 = vmul.f32 %v1685_v47, %v2116_v44  ;;  %vm711_vm9 = vcmp.eq.f32.partialorder %v2124_v49, inf  ;;  %v714_v41 = vand.u32 2147483648, %v2124_v49 }
  0x90   : > { %v2129_v51 = vpop.xlane.xlu2 %312  ;;  %1690 = vrsqrt.f32 %v2126_v50  ;;  %v694_v53 = vmul.f32 %v1683_v46, %v693_v48  ;;  %v405_v55 = vmul.f32 %v1687_v52, %v2119_v45  ;;  %vm713_vm10 = vcmp.eq.f32.partialorder %v2124_v49, 0.0 }
  0x91   : > { %1692 = vrsqrt.f32 %v2129_v51  ;;  %v598_v58 = vmul.f32 %v1685_v47, %v597_v54  ;;  %vm615_vm11 = vcmp.eq.f32.partialorder %v2126_v50, inf  ;;  %vm617_vm12 = vcmp.eq.f32.partialorder %v2126_v50, 0.0 }
  0x92   : > { %v695_v57 = vmul.f32 0.5, %v694_v53  ;;  %v406_v1 = vmul.f32 %v1687_v52, %v405_v55  ;;  %v1639_v53 = vld [vmem:[%s3058_s2 + $0x10] sm:$0xff]  ;;  %vm423_vm13 = vcmp.eq.f32.partialorder %v2129_v51, inf  ;;  %vm425_vm14 = vcmp.eq.f32.partialorder %v2129_v51, 0.0 }
  0x93   : > { %v599_v3 = vmul.f32 0.5, %v598_v58  ;;  %1342 = vmatpush.bf16.msra.mxu0 %v1639_v53  ;;  %1645 = vmatpush.bf16.msra.mxu2 %v1639_v53 }
  0x94   : > { %v696_v2 = vsub.f32 1.5, %v695_v57  ;;  %v407_v8 = vmul.f32 0.5, %v406_v1  ;;  %1646 = vmatpush.bf16.msra.mxu3 %v1639_v53  ;;  %1644 = vmatpush.bf16.msra.mxu1 %v1639_v53 }
  0x95   : > { %v1689_v56 = vpop.eup %1688  ;;  %v600_v11 = vsub.f32 1.5, %v599_v3 }
  0x96   : > { %v1691_v59 = vpop.eup %1690  ;;  %v705_v60 = vmul.f32 %v1689_v56, %v2124_v49  ;;  %v2136_v61 = vpop.xlane.xlu1 %336  ;;  %v697_v10 = vmul.f32 %v1683_v46, %v696_v2  ;;  %v408_v19 = vsub.f32 1.5, %v407_v8 }
  0x97   : > { %v2138_v62 = vpop.xlane.xlu0 %333  ;;  %v609_v63 = vmul.f32 %v1691_v59, %v2126_v50  ;;  %1694 = vrsqrt.f32 %v2136_v61  ;;  %v2142_v0 = vpop.eup %1692  ;;  %v601_v21 = vmul.f32 %v1685_v47, %v600_v11  ;;  %v522_v11 = vand.u32 2147483648, %v2136_v61 }
  0x98   : > { %v2144_v4 = vpop.xlane.xlu2 %363  ;;  %v706_v5 = vmul.f32 %v1689_v56, %v705_v60  ;;  %v417_v7 = vmul.f32 %v2142_v0, %v2129_v51  ;;  %1696 = vrsqrt.f32 %v2138_v62  ;;  %v698_v20 = vmul.f32 %v697_v10, %v2114_v43 }
  0x99   : > { %v610_v6 = vmul.f32 %v1691_v59, %v609_v63  ;;  %1698 = vrsqrt.f32 %v2144_v4  ;;  %v409_v31 = vmul.f32 %v1687_v52, %v408_v19  ;;  %v602_v34 = vmul.f32 %v601_v21, %v2116_v44 }
  0x9a   : > { %v707_v12 = vmul.f32 0.5, %v706_v5  ;;  %v418_v14 = vmul.f32 %v2142_v0, %v417_v7  ;;  %v700_v33 = vsel %vm699_vm3, %v2114_v43, %v698_v20  ;;  %v618_v43 = vand.u32 2147483648, %v2126_v50  ;;  %v1638_v7 = vld [vmem:[%s3058_s2 + $0x8] sm:$0xff] }
  0x9b   : > { %v611_v13 = vmul.f32 0.5, %v610_v6  ;;  %v410_v48 = vmul.f32 %v409_v31, %v2119_v45  ;;  %v2207_v54 = vsel %vm701_vm4, %v702_v26, %v700_v33  ;;  %v604_v55 = vsel %vm603_vm5, %v2116_v44, %v602_v34  ;;  %1343 = vmatpush.bf16.msra.mxu0 %v1638_v7  ;;  %1648 = vmatpush.bf16.msra.mxu2 %v1638_v7 }
  0x9c   : > { %v708_v23 = vsub.f32 1.5, %v707_v12  ;;  %v419_v25 = vmul.f32 0.5, %v418_v14  ;;  %v812_v8 = vmax.f32 %v2207_v54, 1e-15  ;;  %v2237_v10 = vsel %vm605_vm6, %v606_v30, %v604_v55  ;;  %1649 = vmatpush.bf16.msra.mxu3 %v1638_v7  ;;  %1647 = vmatpush.bf16.msra.mxu1 %v1638_v7 }
  0x9d   : > { %v2149_v9 = vpop.eup %1694  ;;  %v612_v24 = vsub.f32 1.5, %v611_v13  ;;  %v412_v3 = vsel %vm411_vm7, %v2119_v45, %v410_v48  ;;  %vm519_vm15 = vcmp.eq.f32.partialorder %v2136_v61, inf  ;;  %v1637_v45 = vld [vmem:[%s3058_s2] sm:$0xff]  ;;  %vm521_vm1 = vcmp.eq.f32.partialorder %v2136_v61, 0.0 }
  0x9e   : > { %v2152_v15 = vpop.xlane.xlu1 %387  ;;  %v513_v16 = vmul.f32 %v2149_v9, %v2136_v61  ;;  %v2158_v18 = vpop.eup %1696  ;;  %v709_v37 = vmul.f32 %v1689_v56, %v708_v23  ;;  %v420_v39 = vsub.f32 1.5, %v419_v25  ;;  %v2258_v20 = vsel %vm413_vm8, %v414_v35, %v412_v3 }
  0x9f   : > { %v2156_v17 = vpop.xlane.xlu0 %366  ;;  %1700 = vrsqrt.f32 %v2152_v15  ;;  %v501_v28 = vmul.f32 %v2158_v18, %v2138_v62  ;;  %v2185_v36 = vpop.eup %1698  ;;  %v613_v38 = vmul.f32 %v1691_v59, %v612_v24  ;;  %1344 = vmatpush.bf16.msra.mxu0 %v1637_v45  ;;  %1651 = vmatpush.bf16.msra.mxu2 %v1637_v45  ;;  %vm507_vm2 = vcmp.eq.f32.partialorder %v2138_v62, inf }
  0xa0   : > { %v514_v27 = vmul.f32 %v2149_v9, %v513_v16  ;;  %v2171_v29 = vpop.xlane.xlu2 %390  ;;  %1702 = vrsqrt.f32 %v2156_v17  ;;  %v621_v52 = vmul.f32 %v2185_v36, %v2144_v4  ;;  %v710_v58 = vmul.f32 %v709_v37, %v2124_v49  ;;  %1652 = vmatpush.bf16.msra.mxu3 %v1637_v45  ;;  %1650 = vmatpush.bf16.msra.mxu1 %v1637_v45 }
  0xa1   : > { %v502_v46 = vmul.f32 %v2158_v18, %v501_v28  ;;  %1704 = vrsqrt.f32 %v2171_v29  ;;  %v614_v59 = vmul.f32 %v613_v38, %v2126_v50  ;;  %v421_v60 = vmul.f32 %v2142_v0, %v420_v39 }
  0xa2   : > { %v515_v42 = vmul.f32 0.5, %v514_v27  ;;  %v426_v0 = vand.u32 2147483648, %v2129_v51  ;;  %v622_v5 = vmul.f32 %v2185_v36, %v621_v52  ;;  %v712_v16 = vsel %vm711_vm9, %v2124_v49, %v710_v58 }
  0xa3   : > { %v503_v1 = vmul.f32 0.5, %v502_v46  ;;  %v616_v44 = vsel %vm615_vm11, %v2126_v50, %v614_v59  ;;  %v422_v19 = vmul.f32 %v421_v60, %v2129_v51  ;;  %v2277_v31 = vsel %vm713_vm10, %v714_v41, %v712_v16 }
  0xa4   : > { %v516_v63 = vsub.f32 1.5, %v515_v42  ;;  %v623_v27 = vmul.f32 0.5, %v622_v5  ;;  %v2281_v32 = vsel %vm617_vm12, %v618_v43, %v616_v44  ;;  %v788_v49 = vmax.f32 %v2258_v20, 1e-15 }
  0xa5   : > { %v2194_v47 = vpop.eup %1700  ;;  %v504_v23 = vsub.f32 1.5, %v503_v1  ;;  %v424_v34 = vsel %vm423_vm13, %v2129_v51, %v422_v19  ;;  %v510_v46 = vand.u32 2147483648, %v2138_v62  ;;  %v813_v53 = vmax.f32 %v2277_v31, 1e-15 }
  0xa6   : > { %v2189_v40 = vpop.xlane.xlu1 %318  ;;  %v717_v56 = vmul.f32 %v2194_v47, %v2152_v15  ;;  %v2223_v2 = vpop.eup %1702  ;;  %v517_v21 = vmul.f32 %v2149_v9, %v516_v63  ;;  %v804_v9 = vmax.f32 %v2237_v10, 1e-15  ;;  %v624_v48 = vsub.f32 1.5, %v623_v27 }
  0xa7   : > { %v2215_v57 = vpop.xlane.xlu0 %315  ;;  %1706 = vrsqrt.f32 %v2189_v40  ;;  %v633_v12 = vmul.f32 %v2223_v2, %v2156_v17  ;;  %v2245_v14 = vpop.eup %1704  ;;  %v505_v38 = vmul.f32 %v2158_v18, %v504_v23  ;;  %v630_v55 = vand.u32 2147483648, %v2144_v4 }
  0xa8   : > { %v718_v6 = vmul.f32 %v2194_v47, %v717_v56  ;;  %v2243_v13 = vpop.xlane.xlu2 %339  ;;  %1708 = vrsqrt.f32 %v2215_v57  ;;  %v729_v30 = vmul.f32 %v2245_v14, %v2171_v29  ;;  %v518_v50 = vmul.f32 %v517_v21, %v2136_v61 }
  0xa9   : > { %v634_v24 = vmul.f32 %v2223_v2, %v633_v12  ;;  %1710 = vrsqrt.f32 %v2243_v13  ;;  %v805_v59 = vmax.f32 %v2281_v32, 1e-15  ;;  %v2308_v60 = vsel %vm425_vm14, %v426_v0, %v424_v34 }
  0xaa   : > { %v719_v28 = vmul.f32 0.5, %v718_v6  ;;  %v730_v37 = vmul.f32 %v2245_v14, %v729_v30  ;;  %vm509_vm3 = vcmp.eq.f32.partialorder %v2138_v62, 0.0  ;;  %v520_v1 = vsel %vm519_vm15, %v2136_v61, %v518_v50 }
  0xab   : > { %v635_v35 = vmul.f32 0.5, %v634_v24  ;;  %v506_v3 = vmul.f32 %v505_v38, %v2138_v62  ;;  %vm627_vm4 = vcmp.eq.f32.partialorder %v2144_v4, inf  ;;  %vm723_vm5 = vcmp.eq.f32.partialorder %v2152_v15, inf }
  0xac   : > { %v720_v52 = vsub.f32 1.5, %v719_v28  ;;  %v731_v56 = vmul.f32 0.5, %v730_v37  ;;  %v726_v51 = vand.u32 2147483648, %v2152_v15  ;;  %v625_v7 = vmul.f32 %v2185_v36, %v624_v48 }
  0xad   : > { %v2264_v26 = vpop.eup %1706  ;;  %v636_v43 = vsub.f32 1.5, %v635_v35  ;;  %v789_v24 = vmax.f32 %v2308_v60, 1e-15  ;;  %vm639_vm6 = vcmp.eq.f32.partialorder %v2156_v17, inf  ;;  %vm629_vm7 = vcmp.eq.f32.partialorder %v2144_v4, 0.0 }
  0xae   : > { %v2262_v25 = vpop.xlane.xlu1 %369  ;;  %v441_v33 = vmul.f32 %v2264_v26, %v2189_v40  ;;  %v2297_v42 = vpop.eup %1708  ;;  %v721_v12 = vmul.f32 %v2194_v47, %v720_v52  ;;  %v732_v44 = vsub.f32 1.5, %v731_v56  ;;  %v2340_v47 = vsel %vm521_vm1, %v522_v11, %v520_v1 }
  0xaf   : > { %1712 = vrsqrt.f32 %v2262_v25  ;;  %v2295_v41 = vpop.xlane.xlu0 %342  ;;  %v2303_v58 = vpop.eup %1710  ;;  %v429_v63 = vmul.f32 %v2297_v42, %v2215_v57  ;;  %v637_v27 = vmul.f32 %v2223_v2, %v636_v43  ;;  %vm725_vm8 = vcmp.eq.f32.partialorder %v2152_v15, 0.0 }
  0xb0   : > { %v442_v39 = vmul.f32 %v2264_v26, %v441_v33  ;;  %v525_v0 = vmul.f32 %v2303_v58, %v2243_v13  ;;  %v2322_v5 = vpop.xlane.xlu2 %372  ;;  %1714 = vrsqrt.f32 %v2295_v41  ;;  %v642_v28 = vand.u32 2147483648, %v2156_v17 }
  0xb1   : > { %v430_v16 = vmul.f32 %v2297_v42, %v429_v63  ;;  %v508_v2 = vsel %vm507_vm2, %v2138_v62, %v506_v3  ;;  %v626_v34 = vmul.f32 %v625_v7, %v2144_v4  ;;  %v722_v61 = vmul.f32 %v721_v12, %v2152_v15 }
  0xb2   : > { %v443_v18 = vmul.f32 0.5, %v442_v39  ;;  %v526_v21 = vmul.f32 %v2303_v58, %v525_v0  ;;  %vm641_vm9 = vcmp.eq.f32.partialorder %v2156_v17, 0.0  ;;  %1716 = vrsqrt.f32 %v2322_v5 }
  0xb3   : > { %v431_v36 = vmul.f32 0.5, %v430_v16  ;;  %v733_v11 = vmul.f32 %v2245_v14, %v732_v44  ;;  %vm735_vm10 = vcmp.eq.f32.partialorder %v2171_v29, inf  ;;  %v797_v39 = vmax.f32 %v2340_v47, 1e-15 }
  0xb4   : > { %v444_v19 = vsub.f32 1.5, %v443_v18  ;;  %v527_v30 = vmul.f32 0.5, %v526_v21  ;;  %v638_v48 = vmul.f32 %v637_v27, %v2156_v17  ;;  %v738_v52 = vand.u32 2147483648, %v2171_v29 }
  0xb5   : > { %v2324_v6 = vpop.eup %1712  ;;  %v432_v37 = vsub.f32 1.5, %v431_v36  ;;  %v2367_v18 = vsel %vm509_vm3, %v510_v46, %v508_v2  ;;  %vm447_vm11 = vcmp.eq.f32.partialorder %v2189_v40, inf  ;;  %v628_v43 = vsel %vm627_vm4, %v2144_v4, %v626_v34 }
  0xb6   : > { %v645_v23 = vmul.f32 %v2324_v6, %v2262_v25  ;;  %v2346_v33 = vpop.xlane.xlu1 %396  ;;  %v445_v35 = vmul.f32 %v2264_v26, %v444_v19  ;;  %v2360_v38 = vpop.eup %1714  ;;  %v528_v14 = vsub.f32 1.5, %v527_v30  ;;  %v724_v63 = vsel %vm723_vm5, %v2152_v15, %v722_v61 }
  0xb7   : > { %v2358_v50 = vpop.xlane.xlu0 %393  ;;  %v537_v26 = vmul.f32 %v2360_v38, %v2295_v41  ;;  %vm737_vm12 = vcmp.eq.f32.partialorder %v2171_v29, 0.0  ;;  %vm449_vm13 = vcmp.eq.f32.partialorder %v2189_v40, 0.0  ;;  %v450_v62 = vand.u32 2147483648, %v2189_v40 }
  0xb8   : > { %v646_v45 = vmul.f32 %v2324_v6, %v645_v23  ;;  %1718 = vrsqrt.f32 %v2346_v33  ;;  %v734_v46 = vmul.f32 %v733_v11, %v2171_v29  ;;  %v446_v1 = vmul.f32 %v445_v35, %v2189_v40  ;;  %v2387_v7 = vpop.xlane.xlu2 %321  ;;  %v2389_v12 = vpop.eup %1716 }
  0xb9   : > { %v433_v3 = vmul.f32 %v2297_v42, %v432_v37  ;;  %vm435_vm14 = vcmp.eq.f32.partialorder %v2215_v57, inf  ;;  %v538_v0 = vmul.f32 %v2360_v38, %v537_v26  ;;  %v796_v16 = vmax.f32 %v2367_v18, 1e-15 }
  0xba   : > { %v647_v56 = vmul.f32 0.5, %v646_v45  ;;  %v640_v44 = vsel %vm639_vm6, %v2156_v17, %v638_v48  ;;  %1720 = vrsqrt.f32 %v2358_v50  ;;  %v438_v21 = vand.u32 2147483648, %v2215_v57 }
  0xbb   : > { %v529_v42 = vmul.f32 %v2303_v58, %v528_v14  ;;  %vm531_vm15 = vcmp.eq.f32.partialorder %v2243_v13, inf  ;;  %v539_v23 = vmul.f32 0.5, %v538_v0  ;;  %v2403_v27 = vsel %vm629_vm7, %v630_v55, %v628_v43 }
  0xbc   : > { %v648_v19 = vsub.f32 1.5, %v647_v56  ;;  %v2409_v36 = vsel %vm725_vm8, %v726_v51, %v724_v63  ;;  %vm437_vm1 = vcmp.eq.f32.partialorder %v2215_v57, 0.0  ;;  %v534_v30 = vand.u32 2147483648, %v2243_v13 }
  0xbd   : > { %v657_v58 = vmul.f32 %v2389_v12, %v2322_v5  ;;  %v2417_v45 = vsel %vm641_vm9, %v642_v28, %v640_v44  ;;  %v736_v4 = vsel %vm735_vm10, %v2171_v29, %v734_v46  ;;  %v448_v15 = vsel %vm447_vm11, %v2189_v40, %v446_v1 }
  0xbe   : > { %v434_v55 = vmul.f32 %v433_v3, %v2215_v57  ;;  %vm533_vm2 = vcmp.eq.f32.partialorder %v2243_v13, 0.0  ;;  %vm651_vm3 = vcmp.eq.f32.partialorder %v2262_v25, inf  ;;  %v2428_v51 = vpop.xlane.xlu1 %345  ;;  %v1719_v2 = vpop.eup %1718  ;;  %v649_v17 = vmul.f32 %v2324_v6, %v648_v19 }
  0xbf   : > { %v540_v28 = vsub.f32 1.5, %v539_v23  ;;  %v658_v34 = vmul.f32 %v2389_v12, %v657_v58  ;;  %1722 = vrsqrt.f32 %v2387_v7  ;;  %v806_v61 = vmax.f32 %v2403_v27, 1e-15  ;;  %v2437_v48 = vpop.xlane.xlu0 %324 }
  0xc0   : > { %v530_v11 = vmul.f32 %v529_v42, %v2243_v13  ;;  %v654_v35 = vand.u32 2147483648, %v2262_v25  ;;  %v753_v37 = vmul.f32 %v1719_v2, %v2346_v33  ;;  %v1721_v56 = vpop.eup %1720  ;;  %v814_v14 = vmax.f32 %v2409_v36, 1e-15  ;;  %v2462_v19 = vpop.xlane.xlu2 %348 }
  0xc1   : > { %v807_v6 = vmax.f32 %v2417_v45, 1e-15  ;;  %vm653_vm4 = vcmp.eq.f32.partialorder %v2262_v25, 0.0  ;;  %v659_v26 = vmul.f32 0.5, %v658_v34  ;;  %1724 = vrsqrt.f32 %v2428_v51 }
  0xc2   : > { %v2445_v43 = vsel %vm737_vm12, %v738_v52, %v736_v4  ;;  %v2449_v63 = vsel %vm449_vm13, %v450_v62, %v448_v15  ;;  %vm543_vm5 = vcmp.eq.f32.partialorder %v2295_v41, inf  ;;  %v754_v46 = vmul.f32 %v1719_v2, %v753_v37 }
  0xc3   : > { %v741_v1 = vmul.f32 %v1721_v56, %v2358_v50  ;;  %v436_v3 = vsel %vm435_vm14, %v2215_v57, %v434_v55  ;;  %v650_v0 = vmul.f32 %v649_v17, %v2262_v25  ;;  %v541_v44 = vmul.f32 %v2360_v38, %v540_v28 }
  0xc4   : > { %1726 = vrsqrt.f32 %v2437_v48  ;;  %v532_v29 = vsel %vm531_vm15, %v2243_v13, %v530_v11  ;;  %v660_v40 = vsub.f32 1.5, %v659_v26  ;;  %v755_v52 = vmul.f32 0.5, %v754_v46 }
  0xc5   : > { %v742_v62 = vmul.f32 %v1721_v56, %v741_v1  ;;  %v1723_v42 = vpop.eup %1722  ;;  %v815_v23 = vmax.f32 %v2445_v43, 1e-15  ;;  %v546_v4 = vand.u32 2147483648, %v2295_v41  ;;  %v666_v38 = vand.u32 2147483648, %v2322_v5 }
  0xc6   : > { %v2470_v15 = vsel %vm437_vm1, %v438_v21, %v436_v3  ;;  %v756_v55 = vsub.f32 1.5, %v755_v52  ;;  %v453_v28 = vmul.f32 %v1723_v42, %v2387_v7  ;;  %v2475_v11 = vsel %vm533_vm2, %v534_v30, %v532_v29 }
  0xc7   : > { %v743_v17 = vmul.f32 0.5, %v742_v62  ;;  %v1725_v34 = vpop.eup %1724  ;;  %v652_v37 = vsel %vm651_vm3, %v2262_v25, %v650_v0  ;;  %v542_v26 = vmul.f32 %v541_v44, %v2295_v41  ;;  %vm545_vm6 = vcmp.eq.f32.partialorder %v2295_v41, 0.0 }
  0xc8   : > { %vm663_vm7 = vcmp.eq.f32.partialorder %v2322_v5, inf  ;;  %1728 = vrsqrt.f32 %v2462_v19  ;;  %v661_v57 = vmul.f32 %v2389_v12, %v660_v40  ;;  %v757_v21 = vmul.f32 %v1719_v2, %v756_v55 }
  0xc9   : > { %vm759_vm8 = vcmp.eq.f32.partialorder %v2346_v33, inf  ;;  %v454_v13 = vmul.f32 %v1723_v42, %v453_v28  ;;  %v549_v30 = vmul.f32 %v1725_v34, %v2428_v51  ;;  %v762_v1 = vand.u32 2147483648, %v2346_v33 }
  0xca   : > { %v1727_v46 = vpop.eup %1726  ;;  %v744_v3 = vsub.f32 1.5, %v743_v17  ;;  %v837_v0 = vmul.f32 %v2163_v22, %v804_v9  ;;  %v2494_v44 = vmul.f32 %v2163_v22, %v805_v59  ;;  %v790_v12 = vmax.f32 %v2470_v15, 1e-15 }
  0xcb   : > { %v2500_v29 = vsel %vm653_vm4, %v654_v35, %v652_v37  ;;  %v455_v40 = vmul.f32 0.5, %v454_v13  ;;  %v544_v10 = vsel %vm543_vm5, %v2295_v41, %v542_v26  ;;  %vm665_vm9 = vcmp.eq.f32.partialorder %v2322_v5, 0.0 }
  0xcc   : > { %v750_v9 = vand.u32 2147483648, %v2358_v50  ;;  %v550_v32 = vmul.f32 %v1725_v34, %v549_v30  ;;  %v465_v59 = vmul.f32 %v1727_v46, %v2437_v48  ;;  %v662_v52 = vmul.f32 %v661_v57, %v2322_v5 }
  0xcd   : > { %v758_v62 = vmul.f32 %v757_v21, %v2346_v33  ;;  %vm761_vm10 = vcmp.eq.f32.partialorder %v2346_v33, 0.0  ;;  %v456_v25 = vsub.f32 1.5, %v455_v40  ;;  %v1587_v35 = vclamps-f32 %v837_v0, 1.0 }
  0xce   : > { %v1729_v55 = vpop.eup %1728  ;;  %v745_v17 = vmul.f32 %v1721_v56, %v744_v3  ;;  %vm747_vm11 = vcmp.eq.f32.partialorder %v2358_v50, inf  ;;  %v551_v28 = vmul.f32 0.5, %v550_v32  ;;  %v466_v37 = vmul.f32 %v1727_v46, %v465_v59 }
  0xcf   : > { %v1588_v26 = vclamps-f32 %v2494_v44, 1.0  ;;  %v808_v13 = vmax.f32 %v2500_v29, 1e-15  ;;  %v457_v30 = vmul.f32 %v1723_v42, %v456_v25  ;;  %vm459_vm12 = vcmp.eq.f32.partialorder %v2387_v7, inf }
  0xd0   : > { %v561_v57 = vmul.f32 %v1729_v55, %v2462_v19  ;;  %v462_v21 = vand.u32 2147483648, %v2387_v7  ;;  %v552_v2 = vsub.f32 1.5, %v551_v28  ;;  %v558_v40 = vand.u32 2147483648, %v2428_v51 }
  0xd1   : > { %v467_v58 = vmul.f32 0.5, %v466_v37  ;;  %v2520_v56 = vsel %vm545_vm6, %v546_v4, %v544_v10  ;;  %v664_v3 = vsel %vm663_vm7, %v2322_v5, %v662_v52  ;;  %vm749_vm13 = vcmp.eq.f32.partialorder %v2358_v50, 0.0 }
  0xd2   : > { %vm461_vm14 = vcmp.eq.f32.partialorder %v2387_v7, 0.0  ;;  %v562_v42 = vmul.f32 %v1729_v55, %v561_v57  ;;  %v965_v32 = vsub.f32 1.0, %v1587_v35  ;;  %v760_v59 = vsel %vm759_vm8, %v2346_v33, %v758_v62 }
  0xd3   : > { %v746_v25 = vmul.f32 %v745_v17, %v2358_v50  ;;  %v468_v28 = vsub.f32 1.5, %v467_v58  ;;  %v966_v41 = vsub.f32 1.0, %v1588_v26  ;;  %v458_v4 = vmul.f32 %v457_v30, %v2387_v7 }
  0xd4   : > { %vm555_vm15 = vcmp.eq.f32.partialorder %v2428_v51, inf  ;;  %vm471_vm1 = vcmp.eq.f32.partialorder %v2437_v48, inf  ;;  %v563_v10 = vmul.f32 0.5, %v562_v42  ;;  %1730 = vrcp.f32 %v965_v32 }
  0xd5   : > { %v845_v52 = vmul.f32 %v2163_v22, %v812_v8  ;;  %v553_v37 = vmul.f32 %v1725_v34, %v552_v2  ;;  %v469_v57 = vmul.f32 %v1727_v46, %v468_v28  ;;  %v474_v62 = vand.u32 2147483648, %v2437_v48  ;;  %v2577_v28 = vpop.xlane.xlu1 %378 }
  0xd6   : > { %1732 = vrcp.f32 %v966_v41  ;;  %v799_v58 = vmax.f32 %v2520_v56, 1e-15  ;;  %v2543_v17 = vsel %vm665_vm9, %v666_v38, %v664_v3  ;;  %v564_v30 = vsub.f32 1.5, %v563_v10 }
  0xd7   : > { %v846_v54 = vmul.f32 %v2163_v22, %v813_v53  ;;  %v2550_v8 = vsel %vm761_vm10, %v762_v1, %v760_v59  ;;  %vm557_vm2 = vcmp.eq.f32.partialorder %v2428_v51, 0.0  ;;  %vm473_vm3 = vcmp.eq.f32.partialorder %v2437_v48, 0.0 }
  0xd8   : > { %v933_v34 = vadd.f32 1.0, %v1587_v35  ;;  %1734 = vrcp.f32 %v837_v0  ;;  %v1595_v46 = vclamps-f32 %v845_v52, 1.0  ;;  %v748_v5 = vsel %vm747_vm11, %v2358_v50, %v746_v25 }
  0xd9   : > { %v460_v31 = vsel %vm459_vm12, %v2387_v7, %v458_v4  ;;  %1736 = vrcp.f32 %v2494_v44  ;;  %v1596_v53 = vclamps-f32 %v846_v54, 1.0  ;;  %v554_v33 = vmul.f32 %v553_v37, %v2428_v51 }
  0xda   : > { %v470_v38 = vmul.f32 %v469_v57, %v2437_v48  ;;  %vm567_vm4 = vcmp.eq.f32.partialorder %v2462_v19, inf  ;;  %v973_v1 = vsub.f32 1.0, %v1595_v46  ;;  %1738 = vrcp.f32 %v845_v52  ;;  %v1731_v0 = vpop.eup %1730 }
  0xdb   : > { %v565_v2 = vmul.f32 %v1729_v55, %v564_v30  ;;  %v934_v35 = vadd.f32 1.0, %v1588_v26  ;;  %v974_v3 = vsub.f32 1.0, %v1596_v53  ;;  %1740 = vrcp.f32 %v846_v54 }
  0xdc   : > { %v1733_v42 = vpop.eup %1732  ;;  %v2568_v44 = vsel %vm749_vm13, %v750_v9, %v748_v5  ;;  %v2572_v32 = vsel %vm461_vm14, %v462_v21, %v460_v31  ;;  %v1029_v59 = vmul.f32 %v1731_v0, %v933_v34  ;;  %1742 = vrcp.f32 %v973_v1  ;;  %v2586_v21 = vpop.xlane.xlu0 %375 }
  0xdd   : > { %vm569_vm5 = vcmp.eq.f32.partialorder %v2462_v19, 0.0  ;;  %v570_v55 = vand.u32 2147483648, %v2462_v19  ;;  %v1030_v26 = vmul.f32 %v1733_v42, %v934_v35  ;;  %1744 = vrcp.f32 %v974_v3  ;;  %v2646_v50 = vpop.xlane.xlu1 %327 }
  0xde   : > { %v1735_v41 = vpop.eup %1734  ;;  %v556_v7 = vsel %vm555_vm15, %v2428_v51, %v554_v33  ;;  %v472_v9 = vsel %vm471_vm1, %v2437_v48, %v470_v38  ;;  %1746 = vlog2.f32 %v1029_v59  ;;  %v566_v37 = vmul.f32 %v565_v2, %v2462_v19  ;;  %v2633_v59 = vpop.xlane.xlu2 %399 }
  0xdf   : > { %v1737_v4 = vpop.eup %1736  ;;  %1748 = vlog2.f32 %v1030_v26  ;;  %v821_v30 = vmul.f32 %v2163_v22, %v788_v49  ;;  %v822_v54 = vmul.f32 %v2163_v22, %v789_v24  ;;  %v2603_v34 = vmul.f32 %v2163_v22, %v796_v16 }
  0xe0   : > { %v2591_v57 = vpop.eup %1738  ;;  %1750 = vrsqrt.f32 %v2577_v28  ;;  %v2611_v31 = vsel %vm557_vm2, %v558_v40, %v556_v7  ;;  %v2615_v20 = vsel %vm473_vm3, %v474_v62, %v472_v9  ;;  %v941_v49 = vadd.f32 1.0, %v1595_v46  ;;  %v1938_v46 = vld [vmem:[%s2048_s24 + $0x80] sm:$0xff] }
  0xe1   : > { %v2605_v5 = vpop.eup %1740  ;;  %1752 = vrsqrt.f32 %v2586_v21  ;;  %v942_v24 = vadd.f32 1.0, %v1596_v53  ;;  %v1571_v18 = vclamps-f32 %v821_v30, 1.0  ;;  %v1572_v16 = vclamps-f32 %v822_v54, 1.0 }
  0xe2   : > { %v1743_v60 = vpop.eup %1742  ;;  %v2621_v33 = vmul.f32 %v2163_v22, %v797_v39  ;;  %v568_v51 = vsel %vm567_vm4, %v2462_v19, %v566_v37  ;;  %1754 = vrcp.f32 %v821_v30  ;;  %v1579_v40 = vclamps-f32 %v2603_v34, 1.0 }
  0xe3   : > { %v1745_v38 = vpop.eup %1744  ;;  %v1037_v48 = vmul.f32 %v1743_v60, %v941_v49  ;;  %v949_v1 = vsub.f32 1.0, %v1571_v18  ;;  %1756 = vrcp.f32 %v822_v54  ;;  %v950_v2 = vsub.f32 1.0, %v1572_v16 }
  0xe4   : > { %v1747_v62 = vpop.eup %1746  ;;  %v1038_v53 = vmul.f32 %v1745_v38, %v942_v24  ;;  %v2631_v3 = vsel %vm569_vm5, %v570_v55, %v568_v51  ;;  %v1580_v26 = vclamps-f32 %v2621_v33, 1.0  ;;  %v957_v30 = vsub.f32 1.0, %v1579_v40 }
  0xe5   : > { %v1749_v0 = vpop.eup %1748  ;;  %v1078_v39 = vmul.f32 0.6931472, %v1747_v62  ;;  %1758 = vlog2.f32 %v1037_v48  ;;  %v690_v49 = vand.u32 2147483648, %v2577_v28  ;;  %vm687_vm6 = vcmp.eq.f32.partialorder %v2577_v28, inf }
  0xe6   : > { %v1751_v35 = vpop.eup %1750  ;;  %v1080_v42 = vmul.f32 0.6931472, %v1749_v0  ;;  %1760 = vlog2.f32 %v1038_v53  ;;  %v958_v38 = vsub.f32 1.0, %v1580_v26  ;;  %v917_v53 = vadd.f32 1.0, %v1571_v18 }
  0xe7   : > { %v1753_v7 = vpop.eup %1752  ;;  %v1125_v9 = vmul.f32 0.5, %v1078_v39  ;;  %v681_v37 = vmul.f32 %v1751_v35, %v2577_v28  ;;  %1762 = vrcp.f32 %v949_v1  ;;  %v918_v39 = vadd.f32 1.0, %v1572_v16 }
  0xe8   : > { %v1126_v54 = vmul.f32 0.5, %v1080_v42  ;;  %v669_v60 = vmul.f32 %v1753_v7, %v2586_v21  ;;  %1764 = vrcp.f32 %v950_v2  ;;  %v2639_v19 = vpop.eup %1754  ;;  %v925_v42 = vadd.f32 1.0, %v1579_v40 }
  0xe9   : > { %v1189_v55 = vmul.f32 %v1735_v41, %v1125_v9  ;;  %v682_v24 = vmul.f32 %v1751_v35, %v681_v37  ;;  %1766 = vrsqrt.f32 %v2633_v59  ;;  %v2642_v51 = vpop.eup %1756  ;;  %v1939_v41 = vld [vmem:[%s2048_s24 + $0x88] sm:$0xff]  ;;  %v926_v18 = vadd.f32 1.0, %v1580_v26 }
  0xea   : > { %v1190_v48 = vmul.f32 %v1737_v4, %v1126_v54  ;;  %v670_v62 = vmul.f32 %v1753_v7, %v669_v60  ;;  %1768 = vrcp.f32 %v957_v30  ;;  %vm689_vm7 = vcmp.eq.f32.partialorder %v2577_v28, 0.0 }
  0xeb   : > { %v1759_v1 = vpop.eup %1758  ;;  %v683_v0 = vmul.f32 0.5, %v682_v24  ;;  %1770 = vrcp.f32 %v958_v38  ;;  %v1221_v47 = vmul.f32 %v1938_v46, %v1189_v55  ;;  %vm675_vm8 = vcmp.eq.f32.partialorder %v2586_v21, inf }
  0xec   : > { %v1761_v2 = vpop.eup %1760  ;;  %v1222_v9 = vmul.f32 %v1939_v41, %v1190_v48  ;;  %v1094_v37 = vmul.f32 0.6931472, %v1759_v1  ;;  %v671_v52 = vmul.f32 0.5, %v670_v62  ;;  %1772 = vrcp.f32 %v2603_v34  ;;  %v2659_v1 = vpop.xlane.xlu0 %402  ;;  %v1941_v41 = vld [vmem:[%s2048_s24 + $0xc8] sm:$0xff] }
  0xed   : > { %v1763_v10 = vpop.eup %1762  ;;  %v1096_v25 = vmul.f32 0.6931472, %v1761_v2  ;;  %v684_v4 = vsub.f32 1.5, %v683_v0  ;;  %1774 = vrsqrt.f32 %v2646_v50  ;;  %v801_v0 = vmax.f32 %v2631_v3, 1e-15 }
  0xee   : > { %v1765_v16 = vpop.eup %1764  ;;  %v1245_v40 = vpack.c.bf16 %v1222_v9, %v1221_v47  ;;  %v1133_v30 = vmul.f32 0.5, %v1094_v37  ;;  %v672_v54 = vsub.f32 1.5, %v671_v52  ;;  %v1013_v60 = vmul.f32 %v1763_v10, %v917_v53  ;;  %v2668_v37 = vpop.xlane.xlu2 %330 }
  0xef   : > { %v1767_v46 = vpop.eup %1766  ;;  %v1134_v55 = vmul.f32 0.5, %v1096_v25  ;;  %v685_v24 = vmul.f32 %v1751_v35, %v684_v4  ;;  %v1014_v38 = vmul.f32 %v1765_v16, %v918_v39  ;;  %v1940_v39 = vld [vmem:[%s2048_s24 + $0xc0] sm:$0xff]  ;;  %vm677_vm9 = vcmp.eq.f32.partialorder %v2586_v21, 0.0 }
  0xf0   : > { %v1769_v48 = vpop.eup %1768  ;;  %1627 = vmatmul.msk.bf16.vlgmr.msra.gmra.mxu2 %vm307_vm0, %v1245_v40  ;;  %v1197_v62 = vmul.f32 %v2591_v57, %v1133_v30  ;;  %v673_v34 = vmul.f32 %v1753_v7, %v672_v54  ;;  %1776 = vlog2.f32 %v1013_v60  ;;  %v765_v52 = vmul.f32 %v1767_v46, %v2633_v59 }
  0xf1   : > { %v1771_v10 = vpop.eup %1770  ;;  %v1198_v25 = vmul.f32 %v2605_v5, %v1134_v55  ;;  %1778 = vlog2.f32 %v1014_v38  ;;  %v1021_v47 = vmul.f32 %v1769_v48, %v925_v42  ;;  %v686_v35 = vmul.f32 %v685_v24, %v2577_v28  ;;  %v2688_v24 = vpop.xlane.xlu1 %354 }
  0xf2   : > { %v674_v26 = vmul.f32 %v673_v34, %v2586_v21  ;;  %v766_v57 = vmul.f32 %v1767_v46, %v765_v52  ;;  %v1022_v53 = vmul.f32 %v1771_v10, %v926_v18  ;;  %v2661_v7 = vpop.eup %1772  ;;  %v1229_v2 = vmul.f32 %v1940_v39, %v1197_v62 }
  0xf3   : > { %v1230_v5 = vmul.f32 %v1941_v41, %v1198_v25  ;;  %1780 = vlog2.f32 %v1021_v47  ;;  %v678_v42 = vand.u32 2147483648, %v2586_v21  ;;  %v1775_v4 = vpop.eup %1774  ;;  %v2674_v16 = vmul.f32 %v2163_v22, %v806_v61 }
  0xf4   : > { %v767_v9 = vmul.f32 0.5, %v766_v57  ;;  %1782 = vlog2.f32 %v1022_v53  ;;  %v2679_v40 = vmul.f32 %v2163_v22, %v807_v6  ;;  %v688_v54 = vsel %vm687_vm6, %v2577_v28, %v686_v35 }
  0xf5   : > { %v1249_v18 = vpack.c.bf16 %v1230_v5, %v1229_v2  ;;  %1784 = vrsqrt.f32 %v2659_v1  ;;  %v676_v60 = vsel %vm675_vm8, %v2586_v21, %v674_v26  ;;  %v477_v27 = vmul.f32 %v1775_v4, %v2646_v50  ;;  %v2713_v5 = vpop.xlane.xlu0 %351 }
  0xf6   : > { %v1777_v30 = vpop.eup %1776  ;;  %v768_v55 = vsub.f32 1.5, %v767_v9  ;;  %vm771_vm10 = vcmp.eq.f32.partialorder %v2633_v59, inf  ;;  %v774_v6 = vand.u32 2147483648, %v2633_v59  ;;  %1786 = vrsqrt.f32 %v2668_v37 }
  0xf7   : > { %v1779_v61 = vpop.eup %1778  ;;  %1631 = vmatmul.msk.bf16.vlgmr.msra.gmra.mxu3 %vm307_vm0, %v1249_v18  ;;  %v1046_v45 = vmul.f32 0.6931472, %v1777_v30  ;;  %1788 = vrcp.f32 %v2621_v33  ;;  %v478_v62 = vmul.f32 %v1775_v4, %v477_v27  ;;  %v2699_v52 = vsel %vm689_vm7, %v690_v49, %v688_v54 }
  0xf8   : > { %v1048_v38 = vmul.f32 0.6931472, %v1779_v61  ;;  %v769_v48 = vmul.f32 %v1767_v46, %v768_v55  ;;  %v2703_v10 = vsel %vm677_vm9, %v678_v42, %v676_v60  ;;  %vm773_vm11 = vcmp.eq.f32.partialorder %v2633_v59, 0.0  ;;  %v1942_v60 = vld [vmem:[%s2048_s24] sm:$0xff]  ;;  %v1943_v55 = vld [vmem:[%s2048_s24 + $0x8] sm:$0xff] }
  0xf9   : > { %v1781_v34 = vpop.eup %1780  ;;  %v1109_v25 = vmul.f32 0.5, %v1046_v45  ;;  %1790 = vrsqrt.f32 %v2688_v24  ;;  %v479_v26 = vmul.f32 0.5, %v478_v62  ;;  %vm483_vm12 = vcmp.eq.f32.partialorder %v2646_v50, inf }
  0xfa   : > { %v1783_v46 = vpop.eup %1782  ;;  %v1110_v47 = vmul.f32 0.5, %v1048_v38  ;;  %v770_v33 = vmul.f32 %v769_v48, %v2633_v59  ;;  %v1062_v35 = vmul.f32 0.6931472, %v1781_v34  ;;  %v486_v21 = vand.u32 2147483648, %v2646_v50 }
  0xfb   : > { %v1785_v57 = vpop.eup %1784  ;;  %v1173_v28 = vmul.f32 %v2639_v19, %v1109_v25  ;;  %v1064_v49 = vmul.f32 0.6931472, %v1783_v46  ;;  %v811_v53 = vmax.f32 %v2699_v52, 1e-15  ;;  %v480_v41 = vsub.f32 1.5, %v479_v26  ;;  %v1944_v46 = vld [vmem:[%s2048_s24 + $0x40] sm:$0xff] }
  0xfc   : > { %v1174_v39 = vmul.f32 %v2642_v51, %v1110_v47  ;;  %v1117_v2 = vmul.f32 0.5, %v1062_v35  ;;  %v1787_v42 = vpop.eup %1786  ;;  %v810_v9 = vmax.f32 %v2703_v10, 1e-15  ;;  %v772_v19 = vsel %vm771_vm10, %v2633_v59, %v770_v33  ;;  %v1945_v26 = vld [vmem:[%s2048_s24 + $0x48] sm:$0xff] }
  0xfd   : > { %v1118_v18 = vmul.f32 0.5, %v1064_v49  ;;  %vm485_vm13 = vcmp.eq.f32.partialorder %v2646_v50, 0.0  ;;  %v777_v30 = vmul.f32 %v1785_v57, %v2659_v1  ;;  %v1789_v54 = vpop.eup %1788  ;;  %v1205_v51 = vmul.f32 %v1942_v60, %v1173_v28 }
  0xfe   : > { %v1206_v27 = vmul.f32 %v1943_v55, %v1174_v39  ;;  %v1181_v61 = vmul.f32 %v2661_v7, %v1117_v2  ;;  %v481_v45 = vmul.f32 %v1775_v4, %v480_v41  ;;  %v489_v34 = vmul.f32 %v1787_v42, %v2668_v37 }
  0xff   : > { %v1791_v38 = vpop.eup %1790  ;;  %v1182_v48 = vmul.f32 %v1789_v54, %v1118_v18  ;;  %v778_v62 = vmul.f32 %v1785_v57, %v777_v30  ;;  %1792 = vrsqrt.f32 %v2713_v5  ;;  %v786_v7 = vand.u32 2147483648, %v2659_v1 }
 0x100   : > { %v1237_v25 = vpack.c.bf16 %v1206_v27, %v1205_v51  ;;  %v1213_v47 = vmul.f32 %v1944_v46, %v1181_v61  ;;  %v482_v33 = vmul.f32 %v481_v45, %v2646_v50  ;;  %v585_v35 = vmul.f32 %v1791_v38, %v2688_v24 }
 0x101   : > { %v1214_v28 = vmul.f32 %v1945_v26, %v1182_v48  ;;  %v779_v49 = vmul.f32 0.5, %v778_v62  ;;  %v490_v4 = vmul.f32 %v1787_v42, %v489_v34  ;;  %v2734_v39 = vsel %vm773_vm11, %v774_v6, %v772_v19 }
 0x102   : > { %1619 = vmatmul.msk.bf16.vlgmr.msra.gmra.mxu0 %vm307_vm0, %v1237_v25  ;;  %vm783_vm14 = vcmp.eq.f32.partialorder %v2659_v1, inf  ;;  %vm495_vm15 = vcmp.eq.f32.partialorder %v2668_v37, inf  ;;  %v498_v2 = vand.u32 2147483648, %v2668_v37  ;;  %v586_v41 = vmul.f32 %v1791_v38, %v585_v35 }
 0x103   : > { %v1241_v18 = vpack.c.bf16 %v1214_v28, %v1213_v47  ;;  %v484_v30 = vsel %vm483_vm12, %v2646_v50, %v482_v33  ;;  %v780_v54 = vsub.f32 1.5, %v779_v49  ;;  %v491_v60 = vmul.f32 0.5, %v490_v4 }
 0x104   : > { %vm497_vm1 = vcmp.eq.f32.partialorder %v2668_v37, 0.0  ;;  %vm591_vm2 = vcmp.eq.f32.partialorder %v2688_v24, inf  ;;  %v587_v59 = vmul.f32 0.5, %v586_v41  ;;  %vm593_vm3 = vcmp.eq.f32.partialorder %v2688_v24, 0.0 }
 0x105   : > { %v1589_v6 = vclamps-f32 %v2674_v16, 1.0  ;;  %v1590_v19 = vclamps-f32 %v2679_v40, 1.0  ;;  %v1793_v51 = vpop.eup %1792  ;;  %1623 = vmatmul.msk.bf16.vlgmr.msra.gmra.mxu1 %vm307_vm0, %v1241_v18  ;;  %v781_v55 = vmul.f32 %v1785_v57, %v780_v54  ;;  %vm785_vm4 = vcmp.eq.f32.partialorder %v2659_v1, 0.0 }
 0x106   : > { %v492_v27 = vsub.f32 1.5, %v491_v60  ;;  %v594_v61 = vand.u32 2147483648, %v2688_v24  ;;  %v847_v45 = vmul.f32 %v2163_v22, %v814_v14  ;;  %v818_v48 = vmax.f32 %v2734_v39, 1e-15 }
 0x107   : > { %v2756_v62 = vsel %vm485_vm13, %v486_v21, %v484_v30  ;;  %v588_v34 = vsub.f32 1.5, %v587_v59  ;;  %v573_v25 = vmul.f32 %v1793_v51, %v2713_v5  ;;  %v782_v57 = vmul.f32 %v781_v55, %v2659_v1 }
 0x108   : > { %v493_v46 = vmul.f32 %v1787_v42, %v492_v27  ;;  %v967_v47 = vsub.f32 1.0, %v1589_v6  ;;  %v968_v33 = vsub.f32 1.0, %v1590_v19  ;;  %1794 = vrcp.f32 %v2674_v16 }
 0x109   : > { %v589_v35 = vmul.f32 %v1791_v38, %v588_v34  ;;  %v574_v26 = vmul.f32 %v1793_v51, %v573_v25  ;;  %v848_v36 = vmul.f32 %v2163_v22, %v815_v23  ;;  %v582_v50 = vand.u32 2147483648, %v2713_v5 }
 0x10a   : > { %v494_v14 = vmul.f32 %v493_v46, %v2668_v37  ;;  %1796 = vrcp.f32 %v967_v47  ;;  %v1597_v21 = vclamps-f32 %v847_v45, 1.0  ;;  %v794_v28 = vmax.f32 %v2756_v62, 1e-15 }
 0x10b   : > { %v590_v42 = vmul.f32 %v589_v35, %v2688_v24  ;;  %v575_v49 = vmul.f32 0.5, %v574_v26  ;;  %vm579_vm5 = vcmp.eq.f32.partialorder %v2713_v5, inf  ;;  %1798 = vrcp.f32 %v968_v33 }
 0x10c   : > { %v784_v43 = vsel %vm783_vm14, %v2659_v1, %v782_v57  ;;  %v496_v23 = vsel %vm495_vm15, %v2668_v37, %v494_v14  ;;  %v935_v16 = vadd.f32 1.0, %v1589_v6  ;;  %v1598_v38 = vclamps-f32 %v848_v36, 1.0 }
 0x10d   : > { %v499_v4 = vsel %vm497_vm1, %v498_v2, %v496_v23  ;;  %v592_v41 = vsel %vm591_vm2, %v2688_v24, %v590_v42  ;;  %v576_v18 = vsub.f32 1.5, %v575_v49  ;;  %v975_v30 = vsub.f32 1.0, %v1597_v21 }
 0x10e   : > { %v595_v54 = vsel %vm593_vm3, %v594_v61, %v592_v41  ;;  %vm581_vm6 = vcmp.eq.f32.partialorder %v2713_v5, 0.0  ;;  %v936_v60 = vadd.f32 1.0, %v1590_v19  ;;  %1800 = vrcp.f32 %v2679_v40  ;;  %v2784_v6 = vpop.eup %1794 }
 0x10f   : > { %v976_v59 = vsub.f32 1.0, %v1598_v38  ;;  %v2788_v37 = vsel %vm785_vm4, %v786_v7, %v784_v43  ;;  %v577_v2 = vmul.f32 %v1793_v51, %v576_v18  ;;  %1802 = vrcp.f32 %v975_v30 }
 0x110   : > { %v823_v55 = vmul.f32 %v2163_v22, %v790_v12  ;;  %v1797_v24 = vpop.eup %1796  ;;  %v795_v27 = vmax.f32 %v499_v4, 1e-15  ;;  %v3061_v19 = vmax.f32 %v2449_v63, 1e-15  ;;  %v3062_v61 = vmax.f32 %v2475_v11, 1e-15 }
 0x111   : > { %1804 = vrcp.f32 %v976_v59  ;;  %v1799_v1 = vpop.eup %1798  ;;  %v803_v7 = vmax.f32 %v595_v54, 1e-15  ;;  %v578_v51 = vmul.f32 %v577_v2, %v2713_v5  ;;  %v1031_v25 = vmul.f32 %v1797_v24, %v935_v16 }
 0x112   : > { %v824_v40 = vmul.f32 %v2163_v22, %v3061_v19  ;;  %v831_v34 = vmul.f32 %v2163_v22, %v3062_v61  ;;  %1806 = vrcp.f32 %v847_v45  ;;  %v1032_v15 = vmul.f32 %v1799_v1, %v936_v60 }
 0x113   : > { %1808 = vrcp.f32 %v848_v36  ;;  %v1573_v12 = vclamps-f32 %v823_v55, 1.0  ;;  %v819_v46 = vmax.f32 %v2788_v37, 1e-15  ;;  %v832_v63 = vmul.f32 %v2163_v22, %v799_v58 }
 0x114   : > { %v1574_v57 = vclamps-f32 %v824_v40, 1.0  ;;  %1810 = vlog2.f32 %v1031_v25  ;;  %v1581_v11 = vclamps-f32 %v831_v34, 1.0  ;;  %v1801_v47 = vpop.eup %1800  ;;  %v580_v33 = vsel %vm579_vm5, %v2713_v5, %v578_v51 }
 0x115   : > { %1812 = vlog2.f32 %v1032_v15  ;;  %v943_v35 = vadd.f32 1.0, %v1597_v21  ;;  %v944_v45 = vadd.f32 1.0, %v1598_v38  ;;  %v1803_v26 = vpop.eup %1802  ;;  %v2808_v36 = vmul.f32 %v2163_v22, %v795_v27 }
 0x116   : > { %v2811_v14 = vmul.f32 %v2163_v22, %v803_v7  ;;  %v951_v42 = vsub.f32 1.0, %v1573_v12  ;;  %1814 = vrcp.f32 %v823_v55  ;;  %v952_v49 = vsub.f32 1.0, %v1574_v57 }
 0x117   : > { %v1805_v56 = vpop.eup %1804  ;;  %v1039_v58 = vmul.f32 %v1803_v26, %v943_v35  ;;  %1816 = vrcp.f32 %v824_v40  ;;  %v1582_v43 = vclamps-f32 %v832_v63, 1.0  ;;  %v2817_v21 = vsel %vm581_vm6, %v582_v50, %v580_v33 }
 0x118   : > { %v2813_v23 = vpop.eup %1806  ;;  %v1040_v16 = vmul.f32 %v1805_v56, %v944_v45  ;;  %1818 = vrcp.f32 %v951_v42  ;;  %v959_v38 = vsub.f32 1.0, %v1581_v11  ;;  %v919_v41 = vadd.f32 1.0, %v1573_v12 }
 0x119   : > { %v2819_v4 = vpop.eup %1808  ;;  %1820 = vlog2.f32 %v1039_v58  ;;  %v960_v18 = vsub.f32 1.0, %v1582_v43  ;;  %v841_v30 = vmul.f32 %v2163_v22, %v808_v13  ;;  %v920_v60 = vadd.f32 1.0, %v1574_v57 }
 0x11a   : > { %v1811_v54 = vpop.eup %1810  ;;  %1822 = vlog2.f32 %v1040_v16  ;;  %v927_v59 = vadd.f32 1.0, %v1581_v11  ;;  %v3063_v5 = vmax.f32 %v2543_v17, 1e-15  ;;  %v3064_v27 = vmax.f32 %v2568_v44, 1e-15 }
 0x11b   : > { %v1813_v2 = vpop.eup %1812  ;;  %v1082_v55 = vmul.f32 0.6931472, %v1811_v54  ;;  %1824 = vrcp.f32 %v952_v49  ;;  %v1591_v24 = vclamps-f32 %v841_v30, 1.0  ;;  %v928_v40 = vadd.f32 1.0, %v1582_v43  ;;  %v1946_v49 = vld [vmem:[%s2048_s24 + $0x90] sm:$0xff] }
 0x11c   : > { %v2827_v50 = vmul.f32 %v2163_v22, %v3063_v5  ;;  %v2832_v19 = vmul.f32 %v2163_v22, %v3064_v27  ;;  %v2834_v29 = vpop.eup %1814  ;;  %v1084_v13 = vmul.f32 0.6931472, %v1813_v2  ;;  %1826 = vrcp.f32 %v959_v38 }
 0x11d   : > { %v2837_v17 = vpop.eup %1816  ;;  %v1127_v1 = vmul.f32 0.5, %v1082_v55  ;;  %1828 = vrcp.f32 %v960_v18  ;;  %v969_v7 = vsub.f32 1.0, %v1591_v24  ;;  %v3065_v51 = vmax.f32 %v2550_v8, 1e-15  ;;  %v1947_v18 = vld [vmem:[%s2048_s24 + $0x98] sm:$0xff] }
 0x11e   : > { %v1592_v61 = vclamps-f32 %v2827_v50, 1.0  ;;  %v1819_v44 = vpop.eup %1818  ;;  %v1128_v15 = vmul.f32 0.5, %v1084_v13  ;;  %1830 = vrcp.f32 %v831_v34  ;;  %v3066_v57 = vmax.f32 %v2572_v32, 1e-15 }
 0x11f   : > { %v2842_v25 = vmul.f32 %v2163_v22, %v3065_v51  ;;  %v1821_v33 = vpop.eup %1820  ;;  %v1191_v35 = vmul.f32 %v2784_v6, %v1127_v1  ;;  %v1015_v45 = vmul.f32 %v1819_v44, %v919_v41  ;;  %1832 = vrcp.f32 %v832_v63  ;;  %v1948_v44 = vld [vmem:[%s2048_s24 + $0xd0] sm:$0xff] }
 0x120   : > { %v970_v12 = vsub.f32 1.0, %v1592_v61  ;;  %v2847_v11 = vmul.f32 %v2163_v22, %v3066_v57  ;;  %v1599_v8 = vclamps-f32 %v2832_v19, 1.0  ;;  %v1823_v26 = vpop.eup %1822  ;;  %v1192_v42 = vmul.f32 %v1801_v47, %v1128_v15  ;;  %v1949_v57 = vld [vmem:[%s2048_s24 + $0xd8] sm:$0xff] }
 0x121   : > { %v1098_v56 = vmul.f32 0.6931472, %v1821_v33  ;;  %v937_v58 = vadd.f32 1.0, %v1591_v24  ;;  %1834 = vrcp.f32 %v969_v7  ;;  %v1825_v34 = vpop.eup %1824  ;;  %v1223_v43 = vmul.f32 %v1946_v49, %v1191_v35 }
 0x122   : > { %v1100_v32 = vmul.f32 0.6931472, %v1823_v26  ;;  %1836 = vlog2.f32 %v1015_v45  ;;  %v1600_v16 = vclamps-f32 %v2842_v25, 1.0  ;;  %v1827_v38 = vpop.eup %1826  ;;  %v1224_v6 = vmul.f32 %v1947_v18, %v1192_v42 }
 0x123   : > { %v1135_v54 = vmul.f32 0.5, %v1098_v56  ;;  %v1016_v41 = vmul.f32 %v1825_v34, %v920_v60  ;;  %1838 = vrcp.f32 %v970_v12  ;;  %v1829_v63 = vpop.eup %1828  ;;  %v1023_v47 = vmul.f32 %v1827_v38, %v927_v59 }
 0x124   : > { %v1136_v5 = vmul.f32 0.5, %v1100_v32  ;;  %1840 = vrcp.f32 %v841_v30  ;;  %v977_v2 = vsub.f32 1.0, %v1599_v8  ;;  %v2854_v55 = vpop.eup %1830  ;;  %v1246_v24 = vpack.c.bf16 %v1224_v6, %v1223_v43 }
 0x125   : > { %v1199_v27 = vmul.f32 %v2813_v23, %v1135_v54  ;;  %1842 = vlog2.f32 %v1016_v41  ;;  %v1024_v13 = vmul.f32 %v1829_v63, %v928_v40  ;;  %v2857_v1 = vpop.eup %1832  ;;  %v938_v60 = vadd.f32 1.0, %v1592_v61 }
 0x126   : > { %v1200_v7 = vmul.f32 %v2819_v4, %v1136_v5  ;;  %1844 = vlog2.f32 %v1023_v47  ;;  %v3067_v51 = vmax.f32 %v2615_v20, 1e-15  ;;  %1628 = vmatmul.msk.bf16.gmra.mxu2 %vm307_vm0, %v1246_v24  ;;  %v978_v23 = vsub.f32 1.0, %v1600_v16 }
 0x127   : > { %v1835_v30 = vpop.eup %1834  ;;  %v1231_v15 = vmul.f32 %v1948_v44, %v1199_v27  ;;  %1846 = vlog2.f32 %v1024_v13  ;;  %v1575_v40 = vclamps-f32 %v2847_v11, 1.0  ;;  %v802_v35 = vmax.f32 %v2817_v21, 1e-15 }
 0x128   : > { %v2863_v59 = vmul.f32 %v2163_v22, %v3067_v51  ;;  %v1837_v12 = vpop.eup %1836  ;;  %v1232_v33 = vmul.f32 %v1949_v57, %v1200_v7  ;;  %v1033_v4 = vmul.f32 %v1835_v30, %v937_v58  ;;  %1848 = vrcp.f32 %v2827_v50  ;;  %v1950_v7 = vld [vmem:[%s2048_s24 + $0x10] sm:$0xff]  ;;  %v1951_v57 = vld [vmem:[%s2048_s24 + $0x18] sm:$0xff] }
 0x129   : > { %v1839_v61 = vpop.eup %1838  ;;  %v1050_v45 = vmul.f32 0.6931472, %v1837_v12  ;;  %1850 = vrcp.f32 %v977_v2  ;;  %v3068_v26 = vmax.f32 %v2611_v31, 1e-15  ;;  %v945_v43 = vadd.f32 1.0, %v1599_v8 }
 0x12a   : > { %v1576_v20 = vclamps-f32 %v2863_v59, 1.0  ;;  %v1841_v56 = vpop.eup %1840  ;;  %v1250_v34 = vpack.c.bf16 %v1232_v33, %v1231_v15  ;;  %v1034_v49 = vmul.f32 %v1839_v61, %v938_v60  ;;  %1852 = vlog2.f32 %v1033_v4  ;;  %v1952_v61 = vld [vmem:[%s2048_s24 + $0x50] sm:$0xff] }
 0x12b   : > { %v2875_v42 = vmul.f32 %v2163_v22, %v3068_v26  ;;  %v1843_v58 = vpop.eup %1842  ;;  %v1111_v32 = vmul.f32 0.5, %v1050_v45  ;;  %1854 = vrcp.f32 %v978_v23  ;;  %v953_v50 = vsub.f32 1.0, %v1575_v40 }
 0x12c   : > { %v2880_v38 = vmul.f32 %v2163_v22, %v801_v0  ;;  %v1845_v18 = vpop.eup %1844  ;;  %1632 = vmatmul.msk.bf16.gmra.mxu3 %vm307_vm0, %v1250_v34  ;;  %v1052_v31 = vmul.f32 0.6931472, %v1843_v58  ;;  %1856 = vlog2.f32 %v1034_v49  ;;  %v946_v6 = vadd.f32 1.0, %v1600_v16 }
 0x12d   : > { %v954_v54 = vsub.f32 1.0, %v1576_v20  ;;  %v1847_v41 = vpop.eup %1846  ;;  %v1175_v8 = vmul.f32 %v2834_v29, %v1111_v32  ;;  %v1066_v63 = vmul.f32 0.6931472, %v1845_v18  ;;  %v921_v5 = vadd.f32 1.0, %v1575_v40 }
 0x12e   : > { %v1583_v47 = vclamps-f32 %v2875_v42, 1.0  ;;  %v1849_v2 = vpop.eup %1848  ;;  %v1112_v3 = vmul.f32 0.5, %v1052_v31  ;;  %v1068_v24 = vmul.f32 0.6931472, %v1847_v41  ;;  %v922_v0 = vadd.f32 1.0, %v1576_v20  ;;  %v1954_v41 = vld [vmem:[%s2048_s24 + $0xa0] sm:$0xff] }
 0x12f   : > { %v2888_v27 = vmul.f32 %v2163_v22, %v810_v9  ;;  %v1851_v13 = vpop.eup %1850  ;;  %v1207_v16 = vmul.f32 %v1950_v7, %v1175_v8  ;;  %v1119_v60 = vmul.f32 0.5, %v1066_v63  ;;  %1858 = vrcp.f32 %v953_v50 }
 0x130   : > { %v1584_v29 = vclamps-f32 %v2880_v38, 1.0  ;;  %v1853_v51 = vpop.eup %1852  ;;  %v1176_v30 = vmul.f32 %v2837_v17, %v1112_v3  ;;  %v1120_v44 = vmul.f32 0.5, %v1068_v24  ;;  %v1041_v15 = vmul.f32 %v1851_v13, %v945_v43  ;;  %v1955_v24 = vld [vmem:[%s2048_s24 + $0xa8] sm:$0xff] }
 0x131   : > { %1860 = vrcp.f32 %v954_v54  ;;  %v1855_v23 = vpop.eup %1854  ;;  %v1183_v10 = vmul.f32 %v2854_v55, %v1119_v60  ;;  %v1086_v9 = vmul.f32 0.6931472, %v1853_v51  ;;  %v961_v40 = vsub.f32 1.0, %v1583_v47  ;;  %v1953_v55 = vld [vmem:[%s2048_s24 + $0x58] sm:$0xff] }
 0x132   : > { %1862 = vrcp.f32 %v2832_v19  ;;  %v1857_v12 = vpop.eup %1856  ;;  %v1208_v33 = vmul.f32 %v1951_v57, %v1176_v30  ;;  %v1184_v4 = vmul.f32 %v2857_v1, %v1120_v44  ;;  %v1042_v20 = vmul.f32 %v1855_v23, %v946_v6 }
 0x133   : > { %1864 = vlog2.f32 %v1041_v15  ;;  %v1215_v17 = vmul.f32 %v1952_v61, %v1183_v10  ;;  %v1088_v45 = vmul.f32 0.6931472, %v1857_v12  ;;  %v1129_v26 = vmul.f32 0.5, %v1086_v9 }
 0x134   : > { %1866 = vrcp.f32 %v2842_v25  ;;  %v1238_v34 = vpack.c.bf16 %v1208_v33, %v1207_v16  ;;  %v1216_v49 = vmul.f32 %v1953_v55, %v1184_v4  ;;  %v962_v19 = vsub.f32 1.0, %v1584_v29  ;;  %v1956_v4 = vld [vmem:[%s2048_s24 + $0xe0] sm:$0xff]  ;;  %v1957_v55 = vld [vmem:[%s2048_s24 + $0xe8] sm:$0xff] }
 0x135   : > { %1868 = vlog2.f32 %v1042_v20  ;;  %v1859_v43 = vpop.eup %1858  ;;  %v1130_v58 = vmul.f32 0.5, %v1088_v45  ;;  %v1193_v32 = vmul.f32 %v1841_v56, %v1129_v26  ;;  %v2903_v1 = vmul.f32 %v2163_v22, %v811_v53 }
 0x136   : > { %1870 = vrcp.f32 %v961_v40  ;;  %1620 = vmatmul.msk.bf16.gmra.mxu0 %vm307_vm0, %v1238_v34  ;;  %v1242_v18 = vpack.c.bf16 %v1216_v49, %v1215_v17  ;;  %v1017_v25 = vmul.f32 %v1859_v43, %v921_v5  ;;  %v1593_v31 = vclamps-f32 %v2888_v27, 1.0 }
 0x137   : > { %v1861_v50 = vpop.eup %1860  ;;  %1872 = vrcp.f32 %v962_v19  ;;  %v1194_v54 = vmul.f32 %v1849_v2, %v1130_v58  ;;  %v1225_v8 = vmul.f32 %v1954_v41, %v1193_v32  ;;  %v929_v53 = vadd.f32 1.0, %v1583_v47 }
 0x138   : > { %v1863_v6 = vpop.eup %1862  ;;  %v1018_v56 = vmul.f32 %v1861_v50, %v922_v0  ;;  %1874 = vrcp.f32 %v2847_v11  ;;  %1624 = vmatmul.msk.bf16.gmra.mxu1 %vm307_vm0, %v1242_v18  ;;  %v1594_v63 = vclamps-f32 %v2903_v1, 1.0  ;;  %v971_v3 = vsub.f32 1.0, %v1593_v31 }
 0x139   : > { %v1865_v52 = vpop.eup %1864  ;;  %1876 = vlog2.f32 %v1017_v25  ;;  %v1226_v13 = vmul.f32 %v1955_v24, %v1194_v54  ;;  %v2915_v2 = vmul.f32 %v2163_v22, %v794_v28  ;;  %v930_v11 = vadd.f32 1.0, %v1584_v29 }
 0x13a   : > { %v1867_v5 = vpop.eup %1866  ;;  %v1102_v7 = vmul.f32 0.6931472, %v1865_v52  ;;  %1878 = vlog2.f32 %v1018_v56  ;;  %v972_v16 = vsub.f32 1.0, %v1594_v63  ;;  %v1578_v47 = vclamps-f32 %v2808_v36, 1.0  ;;  %v1958_v52 = vld [vmem:[%s2048_s24 + $0x20] sm:$0xff] }
 0x13b   : > { %v1869_v0 = vpop.eup %1868  ;;  %1880 = vrcp.f32 %v2863_v59  ;;  %v1247_v51 = vpack.c.bf16 %v1226_v13, %v1225_v8  ;;  %v2922_v62 = vmul.f32 %v2163_v22, %v802_v35  ;;  %v1577_v59 = vclamps-f32 %v2915_v2, 1.0 }
 0x13c   : > { %v1871_v60 = vpop.eup %1870  ;;  %v1104_v30 = vmul.f32 0.6931472, %v1869_v0  ;;  %v1137_v44 = vmul.f32 0.5, %v1102_v7  ;;  %1882 = vrcp.f32 %v971_v3  ;;  %v939_v21 = vadd.f32 1.0, %v1593_v31 }
 0x13d   : > { %v1873_v15 = vpop.eup %1872  ;;  %v1025_v28 = vmul.f32 %v1871_v60, %v929_v53  ;;  %1884 = vrcp.f32 %v972_v16  ;;  %1629 = vmatmul.msk.bf16.gmra.mxu2 %vm307_vm0, %v1247_v51  ;;  %v955_v12 = vsub.f32 1.0, %v1577_v59  ;;  %v956_v35 = vsub.f32 1.0, %v1578_v47 }
 0x13e   : > { %v1875_v29 = vpop.eup %1874  ;;  %v1138_v23 = vmul.f32 0.5, %v1104_v30  ;;  %v1201_v10 = vmul.f32 %v1863_v6, %v1137_v44  ;;  %v1026_v9 = vmul.f32 %v1873_v15, %v930_v11  ;;  %1886 = vrcp.f32 %v2875_v42 }
 0x13f   : > { %v1877_v40 = vpop.eup %1876  ;;  %1888 = vlog2.f32 %v1025_v28  ;;  %v2932_v42 = vmul.f32 %v2163_v22, %v818_v48  ;;  %v2937_v26 = vmul.f32 %v2163_v22, %v819_v46  ;;  %v940_v43 = vadd.f32 1.0, %v1594_v63  ;;  %v1959_v63 = vld [vmem:[%s2048_s24 + $0x28] sm:$0xff] }
 0x140   : > { %v1879_v57 = vpop.eup %1878  ;;  %v1202_v33 = vmul.f32 %v1867_v5, %v1138_v23  ;;  %v1233_v20 = vmul.f32 %v1956_v4, %v1201_v10  ;;  %v1054_v61 = vmul.f32 0.6931472, %v1877_v40  ;;  %1890 = vlog2.f32 %v1026_v9  ;;  %v1960_v23 = vld [vmem:[%s2048_s24 + $0x60] sm:$0xff] }
 0x141   : > { %v1881_v17 = vpop.eup %1880  ;;  %v1056_v45 = vmul.f32 0.6931472, %v1879_v57  ;;  %1892 = vrcp.f32 %v2880_v38  ;;  %v1601_v39 = vclamps-f32 %v2932_v42, 1.0  ;;  %v924_v25 = vadd.f32 1.0, %v1578_v47 }
 0x142   : > { %v1883_v34 = vpop.eup %1882  ;;  %v1234_v49 = vmul.f32 %v1957_v55, %v1202_v33  ;;  %v1113_v19 = vmul.f32 0.5, %v1054_v61  ;;  %1894 = vrcp.f32 %v955_v12  ;;  %v1602_v31 = vclamps-f32 %v2937_v26, 1.0 }
 0x143   : > { %v1885_v58 = vpop.eup %1884  ;;  %v1114_v32 = vmul.f32 0.5, %v1056_v45  ;;  %v1035_v50 = vmul.f32 %v1883_v34, %v939_v21  ;;  %1896 = vrcp.f32 %v956_v35  ;;  %v923_v41 = vadd.f32 1.0, %v1577_v59  ;;  %v1961_v21 = vld [vmem:[%s2048_s24 + $0x68] sm:$0xff] }
 0x144   : > { %v1887_v38 = vpop.eup %1886  ;;  %v1251_v48 = vpack.c.bf16 %v1234_v49, %v1233_v20  ;;  %v1177_v18 = vmul.f32 %v1875_v29, %v1113_v19  ;;  %v1036_v37 = vmul.f32 %v1885_v58, %v940_v43  ;;  %1898 = vrcp.f32 %v2888_v27  ;;  %v1962_v58 = vld [vmem:[%s2048_s24 + $0xb0] sm:$0xff] }
 0x145   : > { %v1889_v22 = vpop.eup %1888  ;;  %v1178_v46 = vmul.f32 %v1881_v17, %v1114_v32  ;;  %1900 = vlog2.f32 %v1035_v50  ;;  %v979_v8 = vsub.f32 1.0, %v1601_v39  ;;  %v1585_v27 = vclamps-f32 %v2922_v62, 1.0 }
 0x146   : > { %v1891_v6 = vpop.eup %1890  ;;  %1633 = vmatmul.msk.bf16.gmra.mxu3 %vm307_vm0, %v1251_v48  ;;  %v1070_v54 = vmul.f32 0.6931472, %v1889_v22  ;;  %1902 = vlog2.f32 %v1036_v37  ;;  %v1209_v53 = vmul.f32 %v1958_v52, %v1177_v18  ;;  %v980_v7 = vsub.f32 1.0, %v1602_v31 }
 0x147   : > { %v1893_v56 = vpop.eup %1892  ;;  %v1210_v3 = vmul.f32 %v1959_v63, %v1178_v46  ;;  %v1072_v5 = vmul.f32 0.6931472, %v1891_v6  ;;  %1904 = vrcp.f32 %v979_v8  ;;  %v1586_v0 = vclamps-f32 %v2811_v14, 1.0  ;;  %v1964_v63 = vld [vmem:[%s2048_s24 + $0x30] sm:$0xff] }
 0x148   : > { %v1895_v24 = vpop.eup %1894  ;;  %v1121_v13 = vmul.f32 0.5, %v1070_v54  ;;  %1906 = vrcp.f32 %v2903_v1  ;;  %v963_v59 = vsub.f32 1.0, %v1585_v27  ;;  %v947_v35 = vadd.f32 1.0, %v1601_v39 }
 0x149   : > { %v1897_v11 = vpop.eup %1896  ;;  %v1239_v16 = vpack.c.bf16 %v1210_v3, %v1209_v53  ;;  %v1122_v47 = vmul.f32 0.5, %v1072_v5  ;;  %v1019_v60 = vmul.f32 %v1895_v24, %v923_v41  ;;  %1908 = vrcp.f32 %v980_v7  ;;  %v1965_v24 = vld [vmem:[%s2048_s24 + $0x38] sm:$0xff] }
 0x14a   : > { %v1899_v51 = vpop.eup %1898  ;;  %v1185_v30 = vmul.f32 %v1887_v38, %v1121_v13  ;;  %v1020_v44 = vmul.f32 %v1897_v11, %v924_v25  ;;  %v964_v40 = vsub.f32 1.0, %v1586_v0  ;;  %v948_v4 = vadd.f32 1.0, %v1602_v31  ;;  %v1963_v38 = vld [vmem:[%s2048_s24 + $0xb8] sm:$0xff] }
 0x14b   : > { %v1901_v15 = vpop.eup %1900  ;;  %1621 = vmatmul.msk.bf16.gmra.mxu0 %vm307_vm0, %v1239_v16  ;;  %v1186_v28 = vmul.f32 %v1893_v56, %v1122_v47  ;;  %1910 = vlog2.f32 %v1019_v60  ;;  %v931_v37 = vadd.f32 1.0, %v1585_v27 }
 0x14c   : > { %v1903_v29 = vpop.eup %1902  ;;  %v1217_v10 = vmul.f32 %v1960_v23, %v1185_v30  ;;  %v1090_v9 = vmul.f32 0.6931472, %v1901_v15  ;;  %1912 = vlog2.f32 %v1020_v44 }
 0x14d   : > { %v1218_v1 = vmul.f32 %v1961_v21, %v1186_v28  ;;  %v1092_v12 = vmul.f32 0.6931472, %v1903_v29  ;;  %1914 = vrcp.f32 %v2915_v2  ;;  %v1905_v57 = vpop.eup %1904  ;;  %v1966_v28 = vld [vmem:[%s2048_s24 + $0xf0] sm:$0xff]  ;;  %v1967_v29 = vld [vmem:[%s2048_s24 + $0xf8] sm:$0xff] }
 0x14e   : > { %v1131_v33 = vmul.f32 0.5, %v1090_v9  ;;  %1916 = vrcp.f32 %v963_v59  ;;  %v1907_v20 = vpop.eup %1906  ;;  %v1043_v45 = vmul.f32 %v1905_v57, %v947_v35  ;;  %v1969_v57 = vld [vmem:[%s2048_s24 + $0x78] sm:$0xff] }
 0x14f   : > { %v1243_v61 = vpack.c.bf16 %v1218_v1, %v1217_v10  ;;  %v1132_v17 = vmul.f32 0.5, %v1092_v12  ;;  %1918 = vrcp.f32 %v964_v40  ;;  %v1909_v34 = vpop.eup %1908  ;;  %v1968_v12 = vld [vmem:[%s2048_s24 + $0x70] sm:$0xff] }
 0x150   : > { %v1195_v55 = vmul.f32 %v1899_v51, %v1131_v33  ;;  %1920 = vrcp.f32 %v2808_v36  ;;  %v1044_v19 = vmul.f32 %v1909_v34, %v948_v4  ;;  %v932_v36 = vadd.f32 1.0, %v1586_v0 }
 0x151   : > { %v1911_v49 = vpop.eup %1910  ;;  %1625 = vmatmul.msk.bf16.gmra.mxu1 %vm307_vm0, %v1243_v61  ;;  %v1196_v2 = vmul.f32 %v1907_v20, %v1132_v17  ;;  %1922 = vlog2.f32 %v1043_v45  ;;  %v2974_v20 = vld [vmem:[%s3059_s3] ss:$0 sm:$0xff] }
 0x152   : > { %v1913_v43 = vpop.eup %1912  ;;  %v1227_v32 = vmul.f32 %v1962_v58, %v1195_v55  ;;  %v1058_v50 = vmul.f32 0.6931472, %v1911_v49  ;;  %1924 = vlog2.f32 %v1044_v19 }
 0x153   : > { %v1915_v39 = vpop.eup %1914  ;;  %v1228_v48 = vmul.f32 %v1963_v38, %v1196_v2  ;;  %v1060_v18 = vmul.f32 0.6931472, %v1913_v43  ;;  %1926 = vrcp.f32 %v2932_v42 }
 0x154   : > { %v1917_v22 = vpop.eup %1916  ;;  %v1115_v46 = vmul.f32 0.5, %v1058_v50  ;;  %1928 = vrcp.f32 %v2937_v26 }
 0x155   : > { %v1919_v25 = vpop.eup %1918  ;;  %v1248_v31 = vpack.c.bf16 %v1228_v48, %v1227_v32  ;;  %v1116_v6 = vmul.f32 0.5, %v1060_v18  ;;  %v1027_v54 = vmul.f32 %v1917_v22, %v931_v37 }
 0x156   : > { %v1921_v41 = vpop.eup %1920  ;;  %v1179_v8 = vmul.f32 %v1915_v39, %v1115_v46  ;;  %v1028_v56 = vmul.f32 %v1919_v25, %v932_v36 }
 0x157   : > { %v1923_v52 = vpop.eup %1922  ;;  %1630 = vmatmul.msk.bf16.gmra.mxu2 %vm307_vm0, %v1248_v31  ;;  %v1180_v53 = vmul.f32 %v1921_v41, %v1116_v6  ;;  %1930 = vlog2.f32 %v1027_v54 }
 0x158   : > { %v1211_v3 = vmul.f32 %v1964_v63, %v1179_v8  ;;  %v1106_v5 = vmul.f32 0.6931472, %v1923_v52  ;;  %1932 = vlog2.f32 %v1028_v56  ;;  %v1925_v27 = vpop.eup %1924 }
 0x159   : > { %v1212_v13 = vmul.f32 %v1965_v24, %v1180_v53  ;;  %v1108_v42 = vmul.f32 0.6931472, %v1925_v27  ;;  %v1927_v0 = vpop.eup %1926  ;;  %1934 = vrcp.f32 %v2922_v62 }
 0x15a   : > { %v1139_v7 = vmul.f32 0.5, %v1106_v5  ;;  %v1929_v26 = vpop.eup %1928  ;;  %1936 = vrcp.f32 %v2811_v14 }
 0x15b   : > { %v1240_v11 = vpack.c.bf16 %v1212_v13, %v1211_v3  ;;  %v1140_v16 = vmul.f32 0.5, %v1108_v42 }
 0x15c   : > { %v1203_v47 = vmul.f32 %v1927_v0, %v1139_v7 }
 0x15d   : > { %v1931_v60 = vpop.eup %1930  ;;  %1622 = vmatmul.msk.bf16.gmra.mxu0 %vm307_vm0, %v1240_v11  ;;  %v1204_v30 = vmul.f32 %v1929_v26, %v1140_v16 }
 0x15e   : > { %v1933_v51 = vpop.eup %1932  ;;  %v1074_v44 = vmul.f32 0.6931472, %v1931_v60  ;;  %v1235_v59 = vmul.f32 %v1966_v28, %v1203_v47 }
 0x15f   : > { %v1076_v15 = vmul.f32 0.6931472, %v1933_v51  ;;  %v1236_v23 = vmul.f32 %v1967_v29, %v1204_v30  ;;  %v1935_v62 = vpop.eup %1934 }
 0x160   : > { %v1123_v10 = vmul.f32 0.5, %v1074_v44  ;;  %v1937_v40 = vpop.eup %1936 }
 0x161   : > { %v1124_v9 = vmul.f32 0.5, %v1076_v15  ;;  %v1252_v21 = vpack.c.bf16 %v1236_v23, %v1235_v59 }
 0x162   : > { %v1187_v14 = vmul.f32 %v1935_v62, %v1123_v10 }
 0x163   : > { %v1188_v1 = vmul.f32 %v1937_v40, %v1124_v9  ;;  %1634 = vmatmul.msk.bf16.gmra.mxu3 %vm307_vm0, %v1252_v21 }
 0x164   : > { %v1219_v35 = vmul.f32 %v1968_v12, %v1187_v14 }
 0x165   : > { %v1220_v33 = vmul.f32 %v1969_v57, %v1188_v1 }
 0x167   : > { %v1244_v4 = vpack.c.bf16 %v1220_v33, %v1219_v35 }
 0x169   : > { %1626 = vmatmul.msk.bf16.gmra.mxu1 %vm307_vm0, %v1244_v4 }
 0x173   : > { %v1386_v61 = vpop.f32.mrf.mxu2 }
 0x174   : > { %v1387_v17 = vadd.f32 %v2974_v20, %v1386_v61 }
 0x176   : > { %1442 = vst [vmem:[%s2982_s13 + $0x80] sm:$0xff] %v1387_v17 }
 0x17a   : > { %v1406_v45 = vpop.f32.mrf.mxu3 }
 0x17b   : > { %v1407_v34 = vadd.f32 %v2974_v20, %v1406_v45  ;;  %v1388_v55 = vpop.f32.mrf.mxu2 }
 0x17c   : > { %v1389_v49 = vadd.f32 %v2974_v20, %v1388_v55 }
 0x17d   : > { %1450 = vst [vmem:[%s2982_s13 + $0xc0] sm:$0xff] %v1407_v34 }
 0x17e   : > { %1443 = vst [vmem:[%s2982_s13 + $0x88] sm:$0xff] %v1389_v49 }
 0x17f   : > { %v1346_v2 = vpop.f32.mrf.mxu0 }
 0x180   : > { %v1347_v19 = vadd.f32 %v2974_v20, %v1346_v2 }
 0x182   : > { %1426 = vst [vmem:[%s2982_s13] sm:$0xff] %v1347_v19  ;;  %v1366_v43 = vpop.f32.mrf.mxu1  ;;  %v1408_v58 = vpop.f32.mrf.mxu3 }
 0x183   : > { %v1367_v32 = vadd.f32 %v2974_v20, %v1366_v43  ;;  %v1409_v50 = vadd.f32 %v2974_v20, %v1408_v58 }
 0x185   : > { %1434 = vst [vmem:[%s2982_s13 + $0x40] sm:$0xff] %v1367_v32 }
 0x186   : > { %1451 = vst [vmem:[%s2982_s13 + $0xc8] sm:$0xff] %v1409_v50 }
 0x187   : > { %v1348_v39 = vpop.f32.mrf.mxu0 }
 0x188   : > { %v1349_v38 = vadd.f32 %v2974_v20, %v1348_v39 }
 0x18a   : > { %1427 = vst [vmem:[%s2982_s13 + $0x8] sm:$0xff] %v1349_v38  ;;  %v1368_v48 = vpop.f32.mrf.mxu1 }
 0x18b   : > { %v1369_v18 = vadd.f32 %v2974_v20, %v1368_v48 }
 0x18d   : > { %1435 = vst [vmem:[%s2982_s13 + $0x48] sm:$0xff] %v1369_v18 }
 0x1a9   : > { %v1391_v37 = vpop.f32.mrf.mxu2 }
 0x1aa   : > { %v1392_v22 = vadd.f32 %v2974_v20, %v1391_v37 }
 0x1ac   : > { %1444 = vst [vmem:[%s2982_s13 + $0x90] sm:$0xff] %v1392_v22 }
 0x1af   : > { %v1411_v46 = vpop.f32.mrf.mxu3 }
 0x1b0   : > { %v1412_v36 = vadd.f32 %v2974_v20, %v1411_v46 }
 0x1b1   : > { %v1393_v25 = vpop.f32.mrf.mxu2 }
 0x1b2   : > { %1452 = vst [vmem:[%s2982_s13 + $0xd0] sm:$0xff] %v1412_v36  ;;  %v1394_v6 = vadd.f32 %v2974_v20, %v1393_v25 }
 0x1b3   : > { %v1351_v31 = vpop.f32.mrf.mxu0 }
 0x1b4   : > { %v1352_v54 = vadd.f32 %v2974_v20, %v1351_v31  ;;  %1445 = vst [vmem:[%s2982_s13 + $0x98] sm:$0xff] %v1394_v6 }
 0x1b5   : > { %v1371_v41 = vpop.f32.mrf.mxu1 }
 0x1b6   : > { %1428 = vst [vmem:[%s2982_s13 + $0x10] sm:$0xff] %v1352_v54  ;;  %v1372_v8 = vadd.f32 %v2974_v20, %v1371_v41 }
 0x1b7   : > { %v1413_v56 = vpop.f32.mrf.mxu3 }
 0x1b8   : > { %v1414_v52 = vadd.f32 %v2974_v20, %v1413_v56  ;;  %1436 = vst [vmem:[%s2982_s13 + $0x50] sm:$0xff] %v1372_v8 }
 0x1ba   : > { %1453 = vst [vmem:[%s2982_s13 + $0xd8] sm:$0xff] %v1414_v52 }
 0x1bb   : > { %v1353_v53 = vpop.f32.mrf.mxu0 }
 0x1bc   : > { %v1354_v63 = vadd.f32 %v2974_v20, %v1353_v53 }
 0x1bd   : > { %v1373_v3 = vpop.f32.mrf.mxu1 }
 0x1be   : > { %1429 = vst [vmem:[%s2982_s13 + $0x18] sm:$0xff] %v1354_v63  ;;  %v1374_v5 = vadd.f32 %v2974_v20, %v1373_v3 }
 0x1c0   : > { %v1396_v27 = vpop.f32.mrf.mxu2  ;;  %1437 = vst [vmem:[%s2982_s13 + $0x58] sm:$0xff] %v1374_v5 }
 0x1c1   : > { %v1397_v24 = vadd.f32 %v2974_v20, %v1396_v27 }
 0x1c3   : > { %1446 = vst [vmem:[%s2982_s13 + $0xa0] sm:$0xff] %v1397_v24 }
 0x1c8   : > { %v1356_v13 = vpop.f32.mrf.mxu0  ;;  %v1398_v42 = vpop.f32.mrf.mxu2 }
 0x1c9   : > { %v1416_v7 = vpop.f32.mrf.mxu3  ;;  %v1357_v0 = vadd.f32 %v2974_v20, %v1356_v13  ;;  %v1399_v11 = vadd.f32 %v2974_v20, %v1398_v42 }
 0x1ca   : > { %v1417_v26 = vadd.f32 %v2974_v20, %v1416_v7 }
 0x1cb   : > { %1430 = vst [vmem:[%s2982_s13 + $0x20] sm:$0xff] %v1357_v0 }
 0x1cc   : > { %1447 = vst [vmem:[%s2982_s13 + $0xa8] sm:$0xff] %v1399_v11 }
 0x1cd   : > { %1454 = vst [vmem:[%s2982_s13 + $0xe0] sm:$0xff] %v1417_v26 }
 0x1ce   : > { %v1376_v16 = vpop.f32.mrf.mxu1 }
 0x1cf   : > { %v1377_v47 = vadd.f32 %v2974_v20, %v1376_v16 }
 0x1d0   : > { %v1358_v60 = vpop.f32.mrf.mxu0 }
 0x1d1   : > { %1438 = vst [vmem:[%s2982_s13 + $0x60] sm:$0xff] %v1377_v47  ;;  %v1418_v51 = vpop.f32.mrf.mxu3  ;;  %v1359_v30 = vadd.f32 %v2974_v20, %v1358_v60 }
 0x1d2   : > { %v1419_v44 = vadd.f32 %v2974_v20, %v1418_v51 }
 0x1d3   : > { %1431 = vst [vmem:[%s2982_s13 + $0x28] sm:$0xff] %v1359_v30 }
 0x1d4   : > { %1455 = vst [vmem:[%s2982_s13 + $0xe8] sm:$0xff] %v1419_v44 }
 0x1d6   : > { %v1378_v15 = vpop.f32.mrf.mxu1 }
 0x1d7   : > { %v1379_v28 = vadd.f32 %v2974_v20, %v1378_v15 }
 0x1d9   : > { %1439 = vst [vmem:[%s2982_s13 + $0x68] sm:$0xff] %v1379_v28 }
 0x1da   : > { %v1401_v59 = vpop.f32.mrf.mxu2  ;;  %v1361_v29 = vpop.f32.mrf.mxu0 }
 0x1db   : > { %v1402_v23 = vadd.f32 %v2974_v20, %v1401_v59  ;;  %v1362_v10 = vadd.f32 %v2974_v20, %v1361_v29 }
 0x1dd   : > { %1448 = vst [vmem:[%s2982_s13 + $0xb0] sm:$0xff] %v1402_v23 }
 0x1de   : > { %1432 = vst [vmem:[%s2982_s13 + $0x30] sm:$0xff] %v1362_v10 }
 0x1e2   : > { %v1403_v62 = vpop.f32.mrf.mxu2  ;;  %v1363_v9 = vpop.f32.mrf.mxu0 }
 0x1e3   : > { %v1404_v40 = vadd.f32 %v2974_v20, %v1403_v62  ;;  %v1364_v21 = vadd.f32 %v2974_v20, %v1363_v9 }
 0x1e5   : > { %1449 = vst [vmem:[%s2982_s13 + $0xb8] sm:$0xff] %v1404_v40 }
 0x1e6   : > { %1433 = vst [vmem:[%s2982_s13 + $0x38] sm:$0xff] %v1364_v21  ;;  %v1381_v14 = vpop.f32.mrf.mxu1  ;;  %v1421_v1 = vpop.f32.mrf.mxu3 }
 0x1e7   : > { %v1382_v12 = vadd.f32 %v2974_v20, %v1381_v14  ;;  %v1422_v35 = vadd.f32 %v2974_v20, %v1421_v1 }
 0x1e9   : > { %1440 = vst [vmem:[%s2982_s13 + $0x70] sm:$0xff] %v1382_v12 }
 0x1ea   : > { %1456 = vst [vmem:[%s2982_s13 + $0xf0] sm:$0xff] %v1422_v35 }
 0x1ee   : > { %v1383_v57 = vpop.f32.mrf.mxu1  ;;  %v1423_v33 = vpop.f32.mrf.mxu3 }
 0x1ef   : > { %v1384_v4 = vadd.f32 %v2974_v20, %v1383_v57  ;;  %v1424_v61 = vadd.f32 %v2974_v20, %v1423_v33 }
 0x1f1   : > { %1441 = vst [vmem:[%s2982_s13 + $0x78] sm:$0xff] %v1384_v4 }
 0x1f2   : > { %1457 = vst [vmem:[%s2982_s13 + $0xf8] sm:$0xff] %v1424_v61 }
 0x1f3 PF: > { %s15_s19 = sadd.s32 1, %s1992_s19   ;;  %s3069_s17 = smov %s1988_s18 }
 0x1f4   : > { %p12_p5 = scmp.ge.s32.totalorder %s15_s19, 4   ;;  %s3070_s18 = smov %s3072_s0 }
 0x1f6   :  { %14 = sbr.rel (!%p12_p5) target bundleno = 2 (0x2), region = 68 }

</bundles_post_ra>
